<compile_context>
chip_gen: v5e
topology: v5e:2x2
jax: 0.10.0
libtpu: 0.0.40
codegen_flags: <defaults>
</compile_context>

<pallas_src>
import functools

import numpy as np
import jax
import jax.numpy as jnp
from jax.experimental import pallas as pl
from jax.experimental.pallas import tpu as pltpu


def _round_up(v: int, m: int) -> int:
    return (v + m - 1) // m * m


def _pick_tile_h(h: int, target: int = 8) -> int:
    """Largest divisor of h that is <= target (keeps per-step VMEM small)."""
    for t in range(min(h, target), 0, -1):
        if h % t == 0:
            return t
    return h


# ---------------------------------------------------------------------------
# Kernel: one (batch sample, row tile) step of the modulated conv
# ---------------------------------------------------------------------------
def _modconv_kernel(x_ref, s_ref, w_ref, o_ref, *, kH, kW, demodulate):
    # x_ref: (Hp, Wp, Cin_p)        bf16, 'same'-padded image of this sample
    # s_ref: (Cin_p, 1)             f32, per-sample style
    # w_ref: (kH*kW, Cin_p, Cout_p) f32, pre-scaled equalized weight
    # o_ref: (TH, W, Cout_p)        f32, output row tile
    TH, W, cout_p = o_ref.shape
    kk, cin_p, _ = w_ref.shape
    r = pl.program_id(1)

    # ---- fold modulation (and demodulation) into the weight: small VPU pass.
    s = s_ref[...].reshape(1, cin_p, 1)                 # broadcast over taps/lanes
    wm = w_ref[...] * s                                 # (kk, Cin_p, Cout_p) f32
    if demodulate:
        sig2 = jnp.sum(wm * wm, axis=(0, 1), keepdims=True) + 1e-8   # (1,1,Cout_p)
        wm = wm * jax.lax.rsqrt(sig2)
    wmat = wm.reshape(kk * cin_p, cout_p).astype(jnp.bfloat16)

    # ---- im2col for this row tile (built once), then ONE bf16 MXU matmul.
    THp = TH + kH - 1                                   # halo'd row count
    row0 = pl.multiple_of(r * TH, TH)
    xt = x_ref[pl.ds(row0, THp), :, :]                  # (THp, Wp, Cin_p) bf16
    cols = []
    for kh in range(kH):
        for kw in range(kW):
            # kw shifts the sublane axis by <8: one-time relayout per tap,
            # amortized over the single big matmul below.
            cols.append(xt[kh:kh + TH, kw:kw + W, :].reshape(TH * W, cin_p))
    patch = jnp.concatenate(cols, axis=-1)              # (TH*W, kk*Cin_p) bf16

    acc = jnp.dot(patch, wmat, preferred_element_type=jnp.float32)   # (TH*W, Cout_p)
    o_ref[...] = acc.reshape(TH, W, cout_p).astype(o_ref.dtype)


# ---------------------------------------------------------------------------
# Wrapper: PyTorch-compatible NCHW interface
# ---------------------------------------------------------------------------
def equalized_conv2d_modulated(x_nchw, s, weight, *, lr_multiplier=1.0,
                               demodulate=True, tile_h=None):
    B, cin, H, W = x_nchw.shape
    cout, cin_w, kH, kW = weight.shape
    assert cin_w == cin, "weight Cin mismatch"
    # TODO(synk): even kernel sizes need asymmetric 'same' padding.
    assert kH % 2 == 1 and kW % 2 == 1, "only odd kernels supported"

    cin_p = _round_up(cin, 128)
    cout_p = _round_up(cout, 128)
    ph, pw = (kH - 1) // 2, (kW - 1) // 2
    Hp, Wp = H + 2 * ph, W + 2 * pw

    if tile_h is None:
        tile_h = _pick_tile_h(H)
    n_row_tiles = H // tile_h

    # --- input: NHWC, 'same' spatial pad + zero channel pad, bf16 (half DMA).
    x_nhwc = jnp.transpose(x_nchw, (0, 2, 3, 1))
    x_pad = jnp.pad(
        x_nhwc, ((0, 0), (ph, ph), (pw, pw), (0, cin_p - cin))
    ).astype(jnp.bfloat16)                                        # (B, Hp, Wp, Cin_p)

    # --- weight: equalized scale, (kH*kW, Cin_p, Cout_p), f32 for demod math.
    w_scale = lr_multiplier / np.sqrt(cin * kH * kW)
    w_khwio = jnp.transpose(weight * w_scale, (2, 3, 1, 0))       # (kH,kW,Cin,Cout)
    w_khwio = jnp.pad(w_khwio, ((0, 0), (0, 0), (0, cin_p - cin), (0, cout_p - cout)))
    w3 = w_khwio.reshape(kH * kW, cin_p, cout_p)

    # --- style: (B, Cin_p, 1) so the in-kernel broadcast needs no relayout.
    s3 = jnp.pad(s.astype(jnp.float32), ((0, 0), (0, cin_p - cin)))[:, :, None]

    kernel = functools.partial(_modconv_kernel, kH=kH, kW=kW, demodulate=demodulate)

    y_pad = pl.pallas_call(
        kernel,
        out_shape=jax.ShapeDtypeStruct((B, H, W, cout_p), jnp.float32),
        grid=(B, n_row_tiles),
        in_specs=[
            # full padded image per sample; block index constant over the row
            # axis so it is DMA'd once per sample.
            pl.BlockSpec((None, Hp, Wp, cin_p), lambda b, r: (b, 0, 0, 0)),
            pl.BlockSpec((None, cin_p, 1), lambda b, r: (b, 0, 0)),
            pl.BlockSpec((kH * kW, cin_p, cout_p), lambda b, r: (0, 0, 0)),
        ],
        out_specs=pl.BlockSpec((None, tile_h, W, cout_p), lambda b, r: (b, r, 0, 0)),
        compiler_params=pltpu.CompilerParams(
            dimension_semantics=("parallel", "parallel"),
            # Raise the scoped-VMEM cap above the 32 MiB default but stay well
            # below v7x's 64 MiB physical VMEM; re-derive per generation.
            vmem_limit_bytes=48 * 1024 * 1024,
        ),
    )(x_pad, s3, w3)

    y = y_pad[..., :cout]                                         # drop Cout padding
    return jnp.transpose(y, (0, 3, 1, 2))                         # back to NCHW


# ---------------------------------------------------------------------------
# Pure-JAX reference (mirrors the PyTorch forward exactly, f32 everywhere)
# ---------------------------------------------------------------------------
def reference_forward(x, s, weight, *, lr_multiplier=1.0, demodulate=True):
    B, cin, H, W = x.shape
    cout, _, kH, kW = weight.shape
    w_sc = weight * (lr_multiplier / np.sqrt(cin * kH * kW))
    Wm = s[:, None, :, None, None] * w_sc[None]                   # (B,Cout,Cin,kH,kW)
    if demodulate:
        sigma = jnp.sqrt(jnp.sum(Wm ** 2, axis=(-3, -2, -1), keepdims=True) + 1e-8)
        Wm = Wm / sigma
    outs = []
    for b in range(B):
        o = jax.lax.conv_general_dilated(
            x[b:b + 1], Wm[b], window_strides=(1, 1), padding="SAME",
            dimension_numbers=("NCHW", "OIHW", "NCHW"),
            precision=jax.lax.Precision.HIGHEST)
        outs.append(o)
    return jnp.concatenate(outs, axis=0)


if __name__ == "__main__":
    B, CIN, COUT, H, W, K = 2, 4, 8, 16, 16, 3
    key = jax.random.PRNGKey(0)
    k1, k2, k3 = jax.random.split(key, 3)

    x = jax.random.normal(k1, (B, CIN, H, W), jnp.float32)
    s = jax.random.normal(k2, (B, CIN), jnp.float32) + 1.0        # style input
    weight = jax.random.normal(k3, (COUT, CIN, K, K), jnp.float32)

    fwd = jax.jit(equalized_conv2d_modulated)
    y = fwd(x, s, weight)
    y = jax.block_until_ready(y)

    y_ref = reference_forward(x, s, weight)
    err = float(jnp.max(jnp.abs(y - y_ref)))
    assert y.shape == (B, COUT, H, W), y.shape
    # bf16 MXU operands with f32 accumulation -> tolerance sized accordingly.
    assert err < 5e-2, f"max abs err {err}"
    print("KERNEL_OK")
</pallas_src>

<mosaic_0001>
module attributes {stable_mosaic.version = 11 : i64} {
  func.func @_modconv_kernel(%arg0: i32, %arg1: i32, %arg2: memref<1x18x18x128xbf16, #tpu.memory_space<vmem>>, %arg3: memref<1x128x1xf32, #tpu.memory_space<vmem>>, %arg4: memref<9x128x128xf32, #tpu.memory_space<vmem>>, %arg5: memref<1x8x16x128xf32, #tpu.memory_space<vmem>>) attributes {dimension_semantics = [#tpu.dimension_semantics<parallel>, #tpu.dimension_semantics<parallel>], iteration_bounds = array<i64: 2, 2>, scalar_prefetch = 0 : i64, scratch_operands = 0 : i64, tpu.core_type = #tpu.core_type<tc>, window_params = [{transform_indices = @transform_0, window_bounds = array<i64: 1, 18, 18, 128>}, {transform_indices = @transform_1, window_bounds = array<i64: 1, 128, 1>}, {pipeline_mode = #tpu.pipeline_mode<synchronous>, transform_indices = @transform_2, window_bounds = array<i64: 9, 128, 128>}, {transform_indices = @transform_3, window_bounds = array<i64: 1, 8, 16, 128>}]} {
    %c0 = arith.constant 0 : index
    %c0_0 = arith.constant 0 : index
    %c0_1 = arith.constant 0 : index
    %0 = vector.load %arg3[%c0, %c0_0, %c0_1] : memref<1x128x1xf32, #tpu.memory_space<vmem>>, vector<1x128x1xf32>
    %1 = vector.shape_cast %0 : vector<1x128x1xf32> to vector<128x1xf32>
    %2 = vector.shape_cast %1 : vector<128x1xf32> to vector<1x128x1xf32>
    %c0_2 = arith.constant 0 : index
    %c0_3 = arith.constant 0 : index
    %c0_4 = arith.constant 0 : index
    %3 = vector.load %arg4[%c0_2, %c0_3, %c0_4] : memref<9x128x128xf32, #tpu.memory_space<vmem>>, vector<9x128x128xf32>
    %4 = vector.broadcast %2 : vector<1x128x1xf32> to vector<9x128x128xf32>
    %5 = arith.mulf %3, %4 : vector<9x128x128xf32>
    %6 = arith.mulf %5, %5 : vector<9x128x128xf32>
    %cst = arith.constant dense<0.000000e+00> : vector<128xf32>
    %7 = vector.multi_reduction <add>, %6, %cst [0, 1] : vector<9x128x128xf32> to vector<128xf32>
    %8 = vector.shape_cast %7 : vector<128xf32> to vector<1x1x128xf32>
    %cst_5 = arith.constant 9.99999993E-9 : f32
    %9 = vector.broadcast %cst_5 : f32 to vector<1x1x128xf32>
    %10 = arith.addf %8, %9 : vector<1x1x128xf32>
    %11 = math.rsqrt %10 : vector<1x1x128xf32>
    %12 = vector.broadcast %11 : vector<1x1x128xf32> to vector<9x128x128xf32>
    %13 = arith.mulf %5, %12 : vector<9x128x128xf32>
    %14 = vector.shape_cast %13 : vector<9x128x128xf32> to vector<1152x128xf32>
    %15 = arith.truncf %14 : vector<1152x128xf32> to vector<1152x128xbf16>
    %c8_i32 = arith.constant 8 : i32
    %16 = arith.muli %arg1, %c8_i32 : i32
    %17 = tpu.assume_multiple %16, 8 : i32
    %c0_6 = arith.constant 0 : index
    %18 = arith.index_cast %17 : i32 to index
    %c0_7 = arith.constant 0 : index
    %c0_8 = arith.constant 0 : index
    %19 = vector.load %arg2[%c0_6, %18, %c0_7, %c0_8] : memref<1x18x18x128xbf16, #tpu.memory_space<vmem>>, vector<1x10x18x128xbf16>
    %20 = vector.shape_cast %19 : vector<1x10x18x128xbf16> to vector<10x18x128xbf16>
    %21 = vector.extract_strided_slice %20 {offsets = [0, 0, 0], sizes = [8, 16, 128], strides = [1, 1, 1]} : vector<10x18x128xbf16> to vector<8x16x128xbf16>
    %22 = vector.shape_cast %21 : vector<8x16x128xbf16> to vector<128x128xbf16>
    %23 = vector.extract_strided_slice %20 {offsets = [0, 1, 0], sizes = [8, 16, 128], strides = [1, 1, 1]} : vector<10x18x128xbf16> to vector<8x16x128xbf16>
    %24 = vector.shape_cast %23 : vector<8x16x128xbf16> to vector<128x128xbf16>
    %25 = vector.extract_strided_slice %20 {offsets = [0, 2, 0], sizes = [8, 16, 128], strides = [1, 1, 1]} : vector<10x18x128xbf16> to vector<8x16x128xbf16>
    %26 = vector.shape_cast %25 : vector<8x16x128xbf16> to vector<128x128xbf16>
    %27 = vector.extract_strided_slice %20 {offsets = [1, 0, 0], sizes = [8, 16, 128], strides = [1, 1, 1]} : vector<10x18x128xbf16> to vector<8x16x128xbf16>
    %28 = vector.shape_cast %27 : vector<8x16x128xbf16> to vector<128x128xbf16>
    %29 = vector.extract_strided_slice %20 {offsets = [1, 1, 0], sizes = [8, 16, 128], strides = [1, 1, 1]} : vector<10x18x128xbf16> to vector<8x16x128xbf16>
    %30 = vector.shape_cast %29 : vector<8x16x128xbf16> to vector<128x128xbf16>
    %31 = vector.extract_strided_slice %20 {offsets = [1, 2, 0], sizes = [8, 16, 128], strides = [1, 1, 1]} : vector<10x18x128xbf16> to vector<8x16x128xbf16>
    %32 = vector.shape_cast %31 : vector<8x16x128xbf16> to vector<128x128xbf16>
    %33 = vector.extract_strided_slice %20 {offsets = [2, 0, 0], sizes = [8, 16, 128], strides = [1, 1, 1]} : vector<10x18x128xbf16> to vector<8x16x128xbf16>
    %34 = vector.shape_cast %33 : vector<8x16x128xbf16> to vector<128x128xbf16>
    %35 = vector.extract_strided_slice %20 {offsets = [2, 1, 0], sizes = [8, 16, 128], strides = [1, 1, 1]} : vector<10x18x128xbf16> to vector<8x16x128xbf16>
    %36 = vector.shape_cast %35 : vector<8x16x128xbf16> to vector<128x128xbf16>
    %37 = vector.extract_strided_slice %20 {offsets = [2, 2, 0], sizes = [8, 16, 128], strides = [1, 1, 1]} : vector<10x18x128xbf16> to vector<8x16x128xbf16>
    %38 = vector.shape_cast %37 : vector<8x16x128xbf16> to vector<128x128xbf16>
    %39 = tpu.concatenate %22, %24, %26, %28, %30, %32, %34, %36, %38 in 1 : vector<128x128xbf16>, vector<128x128xbf16>, vector<128x128xbf16>, vector<128x128xbf16>, vector<128x128xbf16>, vector<128x128xbf16>, vector<128x128xbf16>, vector<128x128xbf16>, vector<128x128xbf16> -> vector<128x1152xbf16>
    %cst_9 = arith.constant dense<0.000000e+00> : vector<128x128xf32>
    %40 = tpu.matmul %39, %15, %cst_9 {dimension_numbers = #tpu.dot_dimension_numbers<[1], [0], [0], [1], [0, 0, 1, 1], [], []>} : vector<128x1152xbf16>, vector<1152x128xbf16>, vector<128x128xf32> -> vector<128x128xf32>
    %41 = vector.shape_cast %40 : vector<128x128xf32> to vector<8x16x128xf32>
    %c0_10 = arith.constant 0 : index
    %c0_11 = arith.constant 0 : index
    %c0_12 = arith.constant 0 : index
    %c0_13 = arith.constant 0 : index
    %42 = vector.load %arg5[%c0_10, %c0_11, %c0_12, %c0_13] : memref<1x8x16x128xf32, #tpu.memory_space<vmem>>, vector<1x8x16x128xf32>
    %43 = vector.shape_cast %42 : vector<1x8x16x128xf32> to vector<8x16x128xf32>
    %44 = vector.shape_cast %41 : vector<8x16x128xf32> to vector<1x8x16x128xf32>
    tpu.vector_store %arg5[%c0_10, %c0_11, %c0_12, %c0_13], %44 {strides = array<i32>} : memref<1x8x16x128xf32, #tpu.memory_space<vmem>>, vector<1x8x16x128xf32>,
    return
  }
  func.func @transform_0(%arg0: i32, %arg1: i32) -> (i32, i32, i32, i32) {
    %c0_i32 = arith.constant 0 : i32
    %c0_i32_0 = arith.constant 0 : i32
    %c0_i32_1 = arith.constant 0 : i32
    %c0_i32_2 = arith.constant 0 : i32
    return %arg0, %c0_i32, %c0_i32_0, %c0_i32_1 : i32, i32, i32, i32
  }
  func.func @transform_1(%arg0: i32, %arg1: i32) -> (i32, i32, i32) {
    %c0_i32 = arith.constant 0 : i32
    %c0_i32_0 = arith.constant 0 : i32
    %c0_i32_1 = arith.constant 0 : i32
    return %arg0, %c0_i32, %c0_i32_0 : i32, i32, i32
  }
  func.func @transform_2(%arg0: i32, %arg1: i32) -> (i32, i32, i32) {
    %c0_i32 = arith.constant 0 : i32
    %c0_i32_0 = arith.constant 0 : i32
    %c0_i32_1 = arith.constant 0 : i32
    %c0_i32_2 = arith.constant 0 : i32
    return %c0_i32, %c0_i32_0, %c0_i32_1 : i32, i32, i32
  }
  func.func @transform_3(%arg0: i32, %arg1: i32) -> (i32, i32, i32, i32) {
    %c0_i32 = arith.constant 0 : i32
    %c0_i32_0 = arith.constant 0 : i32
    %c0_i32_1 = arith.constant 0 : i32
    return %arg0, %arg1, %c0_i32, %c0_i32_0 : i32, i32, i32, i32
  }
}

</mosaic_0001>

<bundles_post_ra>
// kernel: equalized_conv2d_modulated.1
= control target key start
LH: loop header
LB: loop body
LE: loop exit
PB: predicated region body
PF: predicated region fallthrough
CT: control target
= control target key end

     0   :  { %s2396_s12 = smov 0   ;;  %s2398_s13 = smov 0   ;;  %s4927_s0 = inlined_call_operand.vmem [shape: bf16[2,18,18,128], index: 0, kind: input, shape index: {}]   ;;  %s4928_s1 = inlined_call_operand.vmem [shape: f32[2,128,1], index: 1, kind: input, shape index: {}]   ;;  %s4929_s2 = inlined_call_operand.vmem [shape: f32[9,128,128], index: 2, kind: input, shape index: {}]   ;;  %s4930_s3 = inlined_call_operand.vmem [shape: f32[2,16,16,128], index: 3, kind: output, shape index: {}]  }
   0x1   :  { %s2400_s14 = smov 0   ;;  %s2402_s15 = smov 0  }
   0x2   :  { %s2404_s16 = smov 0  }
   0x3 LB: > { %s22_s17 = sadd.s32 1, %s2365_s14  ;;  %s25_s18 = sadd.s32 1, %s2369_s15  ;;  %s2373_s16 = sphi %s2404_s16, %s13_s16   ;;  %s2369_s15 = sphi %s2402_s15, %s5319_s15   ;;  %s2365_s14 = sphi %s2400_s14, %s5318_s14   ;;  %s2361_s13 = sphi %s2398_s13, %s5317_s13   ;;  %s2357_s12 = sphi %s2396_s12, %s5316_s12  }
   0x4   : > { %p23_p0 = scmp.ge.s32.totalorder %s22_s17, 2  ;;  %p2185_p1 = scmp.ge.s32.totalorder %s2373_s16, 1 }
   0x5   : > { %p161_p2 = scmp.lt.s32.totalorder %s2373_s16, 5 }
   0x6   : > { %s5321_s17 = smov (%p23_p0, %s22_s17), 0  ;;  %s5323_s18 = smov (!%p23_p0, %s25_s18), %s2369_s15 }
   0x7   : > { %p162_p3 = pnand %p2185_p1, %p161_p2  ;;  %p27_p4 = scmp.ge.s32.totalorder %s5323_s18, 2 }
   0x9   : > { %s5325_s18 = smov (%p27_p4, %s5323_s18), 0  ;;  %165 = sbr.rel (%p162_p3) target bundleno = 928 (0x3a0), region = 32 }
   0xe   : > { %p195_p5 = scmp.lt.s32.totalorder %s2361_s13, 1  ;;  %v2375_v0 = vmov 0   ;;  %v233_v20 = vld [vmem:[%s4929_s2 + $0x8] sm:$0xff]  ;;  %v232_v22 = vld [vmem:[%s4929_s2] sm:$0xff]  ;;  %v234_v25 = vld [vmem:[%s4929_s2 + $0x10] sm:$0xff]  ;;  %s2249_s5 = smul.u32 96, %s2357_s12 }
   0xf   : > { %2328 = vset.pattern.permute.xlu2 %v2375_v0  ;;  %2327 = vset.pattern.permute.xlu1 %v2375_v0  ;;  %v235_v31 = vld [vmem:[%s4929_s2 + $0x18] sm:$0xff]  ;;  %v236_v36 = vld [vmem:[%s4929_s2 + $0x20] sm:$0xff]  ;;  %v237_v40 = vld [vmem:[%s4929_s2 + $0x28] sm:$0xff]  ;;  %vm1154_vm3 = vsmask.f32 3328  ;;  %vm1373_vm5 = vcmask 1042432  }
  0x10   : > { %2326 = vset.pattern.permute.xlu0 %v2375_v0  ;;  %s5327_s13 = smov (!%p195_p5, %s2361_s13), 1  ;;  %v238_v47 = vld [vmem:[%s4929_s2 + $0x30] sm:$0xff]  ;;  %v239_v51 = vld [vmem:[%s4929_s2 + $0x38] sm:$0xff]  ;;  %v240_v53 = vld [vmem:[%s4929_s2 + $0x40] sm:$0xff]  ;;  %vm1155_vm4 = vsmask.f32 7440 }
  0x11   : > { %s2248_s19 = sshll.u32 %s5327_s13, 7  ;;  %v241_v55 = vld [vmem:[%s4929_s2 + $0x48] sm:$0xff]  ;;  %v242_v63 = vld [vmem:[%s4929_s2 + $0x50] sm:$0xff]  ;;  %s2284_s4 = smul.u32 216, %s5327_s13  ;;  %vm1374_vm6 = vcmask 1046532   ;;  %vm4173_vm8 = vmor %vm1154_vm3, %vm1155_vm4 }
  0x12   : > { %s2434_s22 = scalar_lea.vmem %s4928_s1, %s2248_s19  ;;  %vm4153_vm7 = vmor %vm1373_vm5, %vm1374_vm6  ;;  %s2189_s10 = sshll.u32 %s2357_s12, 3 }
  0x13   : > { %v220_v1 = vld [vmem:[%s2434_s22 + $0x20] sm:$0xff]  ;;  %v218_v2 = vld [vmem:[%s2434_s22 + $0x10] sm:$0xff]  ;;  %v221_v4 = vld [vmem:[%s2434_s22 + $0x28] sm:$0xff]  ;;  %s199_s8 = scalar_lea.vmem %s4927_s0, %s2284_s4  ;;  %p208_p6 = scmp.lt.s32.totalorder %s2189_s10, 15 }
  0x14   : > { %v216_v3 = vld [vmem:[%s2434_s22] sm:$0xff]  ;;  %398 = vperm.xlu2 %2328, %v220_v1   ;;  %388 = vperm.xlu1 %2327, %v218_v2   ;;  %v219_v5 = vld [vmem:[%s2434_s22 + $0x18] sm:$0xff]  ;;  %v217_v6 = vld [vmem:[%s2434_s22 + $0x8] sm:$0xff]  ;;  %s3893_s9 = scalar_lea.vmem %s199_s8, %s2249_s5  ;;  %s2191_s11 = sshll.u32 %s5327_s13, 5 }
  0x15   : > { %378 = vperm.xlu0 %2326, %v216_v3   ;;  %v224_v7 = vld [vmem:[%s2434_s22 + $0x40] sm:$0xff]  ;;  %v223_v8 = vld [vmem:[%s2434_s22 + $0x38] sm:$0xff]  ;;  %v222_v9 = vld [vmem:[%s2434_s22 + $0x30] sm:$0xff]  ;;  %s5329_s10 = smov (!%p208_p6, %s2189_s10), 15 }
  0x16   : > { %v227_v10 = vld [vmem:[%s2434_s22 + $0x58] sm:$0xff]  ;;  %v226_v11 = vld [vmem:[%s2434_s22 + $0x50] sm:$0xff]  ;;  %v225_v12 = vld [vmem:[%s2434_s22 + $0x48] sm:$0xff]  ;;  %s2190_s12 = sshll.u32 %s5329_s10, 1 }
  0x17   : > { %v230_v13 = vld [vmem:[%s2434_s22 + $0x70] sm:$0xff]  ;;  %v229_v14 = vld [vmem:[%s2434_s22 + $0x68] sm:$0xff]  ;;  %v228_v15 = vld [vmem:[%s2434_s22 + $0x60] sm:$0xff]  ;;  %s212_s19 = sadd.s32 %s2191_s11, %s2190_s12 }
  0x18   : > { %v231_v16 = vld [vmem:[%s2434_s22 + $0x78] sm:$0xff]  ;;  %v244_v2 = vld [vmem:[%s4929_s2 + $0x60] sm:$0xff]  ;;  %s2192_s20 = sshll.u32 %s212_s19, 3 }
  0x19   : > { %v243_v1 = vld [vmem:[%s4929_s2 + $0x58] sm:$0xff]  ;;  %s4861_s23 = scalar_lea.vmem %s4930_s3, %s2192_s20 }
  0x1c   : > { %403 = vperm.xlu2 %2328, %v221_v4   ;;  %393 = vperm.xlu1 %2327, %v219_v5  }
  0x1d   : > { %383 = vperm.xlu0 %2326, %v217_v6  }
  0x24   : > { %418 = vperm.xlu2 %2328, %v224_v7   ;;  %413 = vperm.xlu1 %2327, %v223_v8  }
  0x25   : > { %408 = vperm.xlu0 %2326, %v222_v9  }
  0x2c   : > { %433 = vperm.xlu2 %2328, %v227_v10   ;;  %428 = vperm.xlu1 %2327, %v226_v11   ;;  %v245_v10 = vld [vmem:[%s4929_s2 + $0x68] sm:$0xff] }
  0x2d   : > { %423 = vperm.xlu0 %2326, %v225_v12  }
  0x34   : > { %448 = vperm.xlu2 %2328, %v230_v13   ;;  %443 = vperm.xlu1 %2327, %v229_v14  }
  0x35   : > { %438 = vperm.xlu0 %2326, %v228_v15  }
  0x3d   : > { %453 = vperm.xlu0 %2326, %v231_v16   ;;  %v246_v16 = vld [vmem:[%s4929_s2 + $0x70] sm:$0xff] }
  0x6e   : > { %v2456_v19 = vpop.permute.xlu2 %398 }
  0x6f   : > { %v2500_v38 = vmul.f32 %v2456_v19, %v236_v36  ;;  %v248_v36 = vld [vmem:[%s4929_s2 + $0x80] sm:$0xff] }
  0x71   : > { %v604_v45 = vmul.f32 %v2500_v38, %v2500_v38 }
  0x76   : > { %v2484_v30 = vpop.permute.xlu2 %403 }
  0x77   : > { %v2516_v46 = vmul.f32 %v2484_v30, %v237_v40  ;;  %v249_v40 = vld [vmem:[%s4929_s2 + $0x88] sm:$0xff] }
  0x79   : > { %v605_v49 = vmul.f32 %v2516_v46, %v2516_v46 }
  0x7e   : > { %v2509_v43 = vpop.permute.xlu2 %418 }
  0x7f   : > { %v2547_v60 = vmul.f32 %v2509_v43, %v240_v53  ;;  %v251_v53 = vld [vmem:[%s4929_s2 + $0x98] sm:$0xff] }
  0x81   : > { %v608_v3 = vmul.f32 %v2547_v60, %v2547_v60 }
  0x86   : > { %v2454_v18 = vpop.permute.xlu1 %388  ;;  %v2542_v58 = vpop.permute.xlu2 %433 }
  0x87   : > { %v2452_v17 = vpop.permute.xlu0 %378  ;;  %v2480_v28 = vmul.f32 %v2454_v18, %v234_v25  ;;  %v2571_v7 = vmul.f32 %v2542_v58, %v243_v1 }
  0x88   : > { %v2470_v24 = vmul.f32 %v2452_v17, %v232_v22 }
  0x89   : > { %v602_v34 = vmul.f32 %v2480_v28, %v2480_v28  ;;  %v611_v25 = vmul.f32 %v2571_v7, %v2571_v7 }
  0x8a   : > { %v600_v29 = vmul.f32 %v2470_v24, %v2470_v24 }
  0x8e   : > { %v2477_v27 = vpop.permute.xlu1 %393  ;;  %v2583_v14 = vpop.permute.xlu2 %448 }
  0x8f   : > { %v2461_v21 = vpop.permute.xlu0 %383  ;;  %v2494_v35 = vmul.f32 %v2477_v27, %v235_v31  ;;  %v2601_v31 = vmul.f32 %v2583_v14, %v246_v16 }
  0x90   : > { %v2467_v23 = vmul.f32 %v2461_v21, %v233_v20  ;;  %v247_v20 = vld [vmem:[%s4929_s2 + $0x78] sm:$0xff] }
  0x91   : > { %v603_v39 = vmul.f32 %v2494_v35, %v2494_v35 }
  0x92   : > { %v601_v26 = vmul.f32 %v2467_v23, %v2467_v23 }
  0x94   : > { %v744_v33 = vadd.f32 %v601_v26, %v600_v29 }
  0x96   : > { %v745_v37 = vadd.f32 %v744_v33, %v602_v34  ;;  %v2507_v41 = vpop.permute.xlu1 %413 }
  0x97   : > { %v2489_v32 = vpop.permute.xlu0 %408  ;;  %v2538_v56 = vmul.f32 %v2507_v41, %v239_v51  ;;  %v2625_v51 = vmul.f32 %v2461_v21, %v249_v40  ;;  %v257_v40 = vld [vmem:[%s4929_s2 + $0xc8] sm:$0xff] }
  0x98   : > { %v746_v42 = vadd.f32 %v745_v37, %v603_v39  ;;  %v2524_v50 = vmul.f32 %v2489_v32, %v238_v47 }
  0x99   : > { %v607_v0 = vmul.f32 %v2538_v56, %v2538_v56  ;;  %5047 = vst [vmem:[#allocation3_spill] sm:$0xff] %v2625_v51  ;;  %v617_v1 = vmul.f32 %v2625_v51, %v2625_v51 }
  0x9a   : > { %v747_v48 = vadd.f32 %v746_v42, %v604_v45  ;;  %v606_v57 = vmul.f32 %v2524_v50, %v2524_v50  ;;  %v2615_v42 = vmul.f32 %v2452_v17, %v248_v36  ;;  %v614_v45 = vmul.f32 %v2601_v31, %v2601_v31 }
  0x9c   : > { %v748_v52 = vadd.f32 %v747_v48, %v605_v49  ;;  %5046 = vst [vmem:[#allocation2_spill] sm:$0xff] %v2615_v42  ;;  %v250_v49 = vld [vmem:[%s4929_s2 + $0x90] sm:$0xff] }
  0x9e   : > { %v2532_v54 = vpop.permute.xlu1 %428  ;;  %v749_v61 = vadd.f32 %v748_v52, %v606_v57  ;;  %v616_v57 = vmul.f32 %v2615_v42, %v2615_v42 }
  0x9f   : > { %v2511_v44 = vpop.permute.xlu0 %423  ;;  %v2566_v4 = vmul.f32 %v2532_v54, %v242_v63  ;;  %v252_v63 = vld [vmem:[%s4929_s2 + $0xa0] sm:$0xff] }
  0xa0   : > { %v2550_v62 = vmul.f32 %v2511_v44, %v241_v55  ;;  %v750_v6 = vadd.f32 %v749_v61, %v607_v0  ;;  %v2631_v55 = vmul.f32 %v2454_v18, %v250_v49  ;;  %v2639_v0 = vmul.f32 %v2477_v27, %v251_v53  ;;  %v258_v49 = vld [vmem:[%s4929_s2 + $0xd0] sm:$0xff] }
  0xa1   : > { %v610_v12 = vmul.f32 %v2566_v4, %v2566_v4  ;;  %v2689_v53 = vmul.f32 %v2511_v44, %v257_v40  ;;  %v263_v40 = vld [vmem:[%s4929_s2 + $0xf8] sm:$0xff] }
  0xa2   : > { %v609_v5 = vmul.f32 %v2550_v62, %v2550_v62  ;;  %v751_v9 = vadd.f32 %v750_v6, %v608_v3  ;;  %5048 = vst [vmem:[#allocation4_spill] sm:$0xff] %v2631_v55  ;;  %v253_v3 = vld [vmem:[%s4929_s2 + $0xa8] sm:$0xff]  ;;  %v618_v6 = vmul.f32 %v2631_v55, %v2631_v55  ;;  %v279_v55 = vld [vmem:[%s4929_s2 + $0x178] sm:$0xff] }
  0xa3   : > { %5049 = vst [vmem:[#allocation5_spill] sm:$0xff] %v2639_v0 }
  0xa4   : > { %v752_v13 = vadd.f32 %v751_v9, %v609_v5  ;;  %v2647_v5 = vmul.f32 %v2456_v19, %v252_v63  ;;  %5055 = vst [vmem:[#allocation11_spill] sm:$0xff] %v2689_v53 }
  0xa6   : > { %v2579_v11 = vpop.permute.xlu1 %443  ;;  %v753_v29 = vadd.f32 %v752_v13, %v610_v12  ;;  %5050 = vst [vmem:[#allocation6_spill] sm:$0xff] %v2647_v5  ;;  %v2655_v12 = vmul.f32 %v2484_v30, %v253_v3  ;;  %v619_v13 = vmul.f32 %v2639_v0, %v2639_v0  ;;  %v260_v3 = vld [vmem:[%s4929_s2 + $0xe0] sm:$0xff] }
  0xa7   : > { %v2544_v59 = vpop.permute.xlu0 %438  ;;  %v2594_v22 = vmul.f32 %v2579_v11, %v245_v10  ;;  %v254_v10 = vld [vmem:[%s4929_s2 + $0xb0] sm:$0xff] }
  0xa8   : > { %v2574_v8 = vmul.f32 %v2544_v59, %v244_v2  ;;  %v754_v34 = vadd.f32 %v753_v29, %v611_v25  ;;  %5051 = vst [vmem:[#allocation7_spill] sm:$0xff] %v2655_v12  ;;  %v620_v25 = vmul.f32 %v2647_v5, %v2647_v5  ;;  %v621_v36 = vmul.f32 %v2655_v12, %v2655_v12  ;;  %v282_v12 = vld [vmem:[%s4929_s2 + $0x190] sm:$0xff] }
  0xa9   : > { %v613_v37 = vmul.f32 %v2594_v22, %v2594_v22 }
  0xaa   : > { %v612_v26 = vmul.f32 %v2574_v8, %v2574_v8 }
  0xac   : > { %v755_v39 = vadd.f32 %v754_v34, %v612_v26  ;;  %v2665_v26 = vmul.f32 %v2489_v32, %v254_v10  ;;  %v256_v34 = vld [vmem:[%s4929_s2 + $0xc0] sm:$0xff] }
  0xae   : > { %v756_v48 = vadd.f32 %v755_v39, %v613_v37  ;;  %5052 = vst [vmem:[#allocation8_spill] sm:$0xff] %v2665_v26 }
  0xaf   : > { %v2585_v15 = vpop.permute.xlu0 %453 }
  0xb0   : > { %v2604_v33 = vmul.f32 %v2585_v15, %v247_v20  ;;  %v757_v52 = vadd.f32 %v756_v48, %v614_v45  ;;  %v255_v20 = vld [vmem:[%s4929_s2 + $0xb8] sm:$0xff]  ;;  %v2679_v45 = vmul.f32 %v2509_v43, %v256_v34 }
  0xb1   : > { %v2673_v37 = vmul.f32 %v2507_v41, %v255_v20  ;;  %v2713_v20 = vmul.f32 %v2544_v59, %v260_v3 }
  0xb2   : > { %v615_v47 = vmul.f32 %v2604_v33, %v2604_v33  ;;  %5054 = vst [vmem:[#allocation10_spill] sm:$0xff] %v2679_v45  ;;  %v624_v63 = vmul.f32 %v2679_v45, %v2679_v45 }
  0xb3   : > { %5053 = vst [vmem:[#allocation9_spill] sm:$0xff] %v2673_v37 }
  0xb4   : > { %v758_v61 = vadd.f32 %v757_v52, %v615_v47  ;;  %v622_v47 = vmul.f32 %v2665_v26, %v2665_v26  ;;  %v623_v52 = vmul.f32 %v2673_v37, %v2673_v37  ;;  %v295_v26 = vld [vmem:[%s4929_s2 + $0x1f8] sm:$0xff] }
  0xb6   : > { %v759_v2 = vadd.f32 %v758_v61, %v616_v57  ;;  %v259_v61 = vld [vmem:[%s4929_s2 + $0xd8] sm:$0xff] }
  0xb8   : > { %v760_v9 = vadd.f32 %v759_v2, %v617_v1  ;;  %v2697_v1 = vmul.f32 %v2532_v54, %v258_v49 }
  0xba   : > { %v761_v16 = vadd.f32 %v760_v9, %v618_v6  ;;  %v2703_v6 = vmul.f32 %v2542_v58, %v259_v61  ;;  %v625_v9 = vmul.f32 %v2689_v53, %v2689_v53  ;;  %v2737_v61 = vmul.f32 %v2585_v15, %v263_v40 }
  0xbc   : > { %v762_v29 = vadd.f32 %v761_v16, %v619_v13  ;;  %v261_v13 = vld [vmem:[%s4929_s2 + $0xe8] sm:$0xff]  ;;  %v626_v16 = vmul.f32 %v2697_v1, %v2697_v1  ;;  %v627_v34 = vmul.f32 %v2703_v6, %v2703_v6 }
  0xbe   : > { %v763_v39 = vadd.f32 %v762_v29, %v620_v25  ;;  %v262_v29 = vld [vmem:[%s4929_s2 + $0xf0] sm:$0xff] }
  0xc0   : > { %v764_v48 = vadd.f32 %v763_v39, %v621_v36  ;;  %v2721_v36 = vmul.f32 %v2579_v11, %v261_v13  ;;  %v266_v13 = vld [vmem:[%s4929_s2 + $0x110] sm:$0xff] }
  0xc2   : > { %v765_v57 = vadd.f32 %v764_v48, %v622_v47  ;;  %v2727_v47 = vmul.f32 %v2583_v14, %v262_v29  ;;  %v628_v48 = vmul.f32 %v2713_v20, %v2713_v20 }
  0xc4   : > { %v766_v2 = vadd.f32 %v765_v57, %v623_v52  ;;  %v264_v52 = vld [vmem:[%s4929_s2 + $0x100] sm:$0xff]  ;;  %v629_v57 = vmul.f32 %v2721_v36, %v2721_v36 }
  0xc5   : > { %v2743_v3 = vmul.f32 %v2452_v17, %v264_v52 }
  0xc6   : > { %v767_v10 = vadd.f32 %v766_v2, %v624_v63  ;;  %v265_v2 = vld [vmem:[%s4929_s2 + $0x108] sm:$0xff] }
  0xc7   : > { %5056 = vst [vmem:[#allocation12_spill] sm:$0xff] %v2743_v3  ;;  %v632_v40 = vmul.f32 %v2743_v3, %v2743_v3  ;;  %v273_v3 = vld [vmem:[%s4929_s2 + $0x148] sm:$0xff] }
  0xc8   : > { %v768_v25 = vadd.f32 %v767_v10, %v625_v9  ;;  %v630_v9 = vmul.f32 %v2727_v47, %v2727_v47 }
  0xca   : > { %v769_v39 = vadd.f32 %v768_v25, %v626_v16  ;;  %v2751_v16 = vmul.f32 %v2461_v21, %v265_v2  ;;  %v631_v25 = vmul.f32 %v2737_v61, %v2737_v61  ;;  %v269_v2 = vld [vmem:[%s4929_s2 + $0x128] sm:$0xff] }
  0xcc   : > { %v770_v49 = vadd.f32 %v769_v39, %v627_v34  ;;  %5057 = vst [vmem:[#allocation13_spill] sm:$0xff] %v2751_v16  ;;  %v267_v34 = vld [vmem:[%s4929_s2 + $0x118] sm:$0xff]  ;;  %v2759_v39 = vmul.f32 %v2454_v18, %v266_v13 }
  0xcd   : > { %v2767_v52 = vmul.f32 %v2477_v27, %v267_v34 }
  0xce   : > { %v771_v63 = vadd.f32 %v770_v49, %v628_v48  ;;  %5058 = vst [vmem:[#allocation14_spill] sm:$0xff] %v2759_v39  ;;  %v268_v49 = vld [vmem:[%s4929_s2 + $0x120] sm:$0xff] }
  0xcf   : > { %5059 = vst [vmem:[#allocation15_spill] sm:$0xff] %v2767_v52  ;;  %v635_v34 = vmul.f32 %v2767_v52, %v2767_v52  ;;  %v276_v52 = vld [vmem:[%s4929_s2 + $0x160] sm:$0xff] }
  0xd0   : > { %v772_v10 = vadd.f32 %v771_v63, %v629_v57  ;;  %v633_v57 = vmul.f32 %v2751_v16, %v2751_v16 }
  0xd2   : > { %v773_v29 = vadd.f32 %v772_v10, %v630_v9  ;;  %v2775_v9 = vmul.f32 %v2456_v19, %v268_v49  ;;  %v634_v10 = vmul.f32 %v2759_v39, %v2759_v39 }
  0xd4   : > { %v774_v48 = vadd.f32 %v773_v29, %v631_v25  ;;  %5060 = vst [vmem:[#allocation16_spill] sm:$0xff] %v2775_v9  ;;  %v270_v25 = vld [vmem:[%s4929_s2 + $0x130] sm:$0xff]  ;;  %v2783_v29 = vmul.f32 %v2484_v30, %v269_v2  ;;  %v636_v49 = vmul.f32 %v2775_v9, %v2775_v9  ;;  %v272_v2 = vld [vmem:[%s4929_s2 + $0x140] sm:$0xff] }
  0xd5   : > { %v2807_v51 = vmul.f32 %v2509_v43, %v272_v2  ;;  %v275_v2 = vld [vmem:[%s4929_s2 + $0x158] sm:$0xff] }
  0xd6   : > { %v775_v63 = vadd.f32 %v774_v48, %v632_v40  ;;  %5061 = vst [vmem:[#allocation17_spill] sm:$0xff] %v2783_v29  ;;  %v271_v48 = vld [vmem:[%s4929_s2 + $0x138] sm:$0xff]  ;;  %v637_v16 = vmul.f32 %v2783_v29, %v2783_v29  ;;  %v2831_v39 = vmul.f32 %v2542_v58, %v275_v2  ;;  %v278_v2 = vld [vmem:[%s4929_s2 + $0x170] sm:$0xff] }
  0xd7   : > { %5064 = vst [vmem:[#allocation20_spill] sm:$0xff] %v2807_v51  ;;  %v640_v42 = vmul.f32 %v2807_v51, %v2807_v51  ;;  %v2855_v29 = vmul.f32 %v2583_v14, %v278_v2  ;;  %v281_v2 = vld [vmem:[%s4929_s2 + $0x188] sm:$0xff] }
  0xd8   : > { %v776_v13 = vadd.f32 %v775_v63, %v633_v57  ;;  %v2793_v57 = vmul.f32 %v2489_v32, %v270_v25  ;;  %5067 = vst [vmem:[#allocation23_spill] sm:$0xff] %v2831_v39  ;;  %v643_v0 = vmul.f32 %v2831_v39, %v2831_v39  ;;  %v2879_v5 = vmul.f32 %v2461_v21, %v281_v2  ;;  %v284_v2 = vld [vmem:[%s4929_s2 + $0x1a0] sm:$0xff] }
  0xda   : > { %v777_v40 = vadd.f32 %v776_v13, %v634_v10  ;;  %5062 = vst [vmem:[#allocation18_spill] sm:$0xff] %v2793_v57  ;;  %v2801_v10 = vmul.f32 %v2507_v41, %v271_v48  ;;  %v638_v25 = vmul.f32 %v2793_v57, %v2793_v57  ;;  %v2903_v57 = vmul.f32 %v2456_v19, %v284_v2  ;;  %v287_v2 = vld [vmem:[%s4929_s2 + $0x1b8] sm:$0xff] }
  0xdb   : > { %5069 = vst [vmem:[#allocation25_spill] sm:$0xff] %v2879_v5 }
  0xdc   : > { %v778_v63 = vadd.f32 %v777_v40, %v635_v34  ;;  %5063 = vst [vmem:[#allocation19_spill] sm:$0xff] %v2801_v10  ;;  %v274_v40 = vld [vmem:[%s4929_s2 + $0x150] sm:$0xff]  ;;  %v639_v48 = vmul.f32 %v2801_v10, %v2801_v10 }
  0xdd   : > { %5072 = vst [vmem:[#allocation28_spill] sm:$0xff] %v2903_v57 }
  0xde   : > { %v779_v13 = vadd.f32 %v778_v63, %v636_v49  ;;  %v2817_v49 = vmul.f32 %v2511_v44, %v273_v3 }
  0xe0   : > { %v780_v34 = vadd.f32 %v779_v13, %v637_v16  ;;  %5065 = vst [vmem:[#allocation21_spill] sm:$0xff] %v2817_v49  ;;  %v2825_v16 = vmul.f32 %v2532_v54, %v274_v40  ;;  %v641_v3 = vmul.f32 %v2817_v49, %v2817_v49  ;;  %v298_v49 = vld [vmem:[%s4929_s2 + $0x210] sm:$0xff] }
  0xe2   : > { %v781_v63 = vadd.f32 %v780_v34, %v638_v25  ;;  %5066 = vst [vmem:[#allocation22_spill] sm:$0xff] %v2825_v16  ;;  %v277_v34 = vld [vmem:[%s4929_s2 + $0x168] sm:$0xff]  ;;  %v642_v40 = vmul.f32 %v2825_v16, %v2825_v16 }
  0xe4   : > { %v782_v13 = vadd.f32 %v781_v63, %v639_v48  ;;  %v2841_v48 = vmul.f32 %v2544_v59, %v276_v52 }
  0xe6   : > { %v783_v25 = vadd.f32 %v782_v13, %v640_v42  ;;  %v2849_v42 = vmul.f32 %v2579_v11, %v277_v34  ;;  %v644_v52 = vmul.f32 %v2841_v48, %v2841_v48 }
  0xe8   : > { %v784_v63 = vadd.f32 %v783_v25, %v641_v3  ;;  %v280_v25 = vld [vmem:[%s4929_s2 + $0x180] sm:$0xff]  ;;  %v645_v34 = vmul.f32 %v2849_v42, %v2849_v42 }
  0xe9   : > { %v2871_v9 = vmul.f32 %v2452_v17, %v280_v25  ;;  %v2887_v25 = vmul.f32 %v2454_v18, %v282_v12  ;;  %v285_v12 = vld [vmem:[%s4929_s2 + $0x1a8] sm:$0xff] }
  0xea   : > { %v785_v13 = vadd.f32 %v784_v63, %v642_v40  ;;  %v2865_v40 = vmul.f32 %v2585_v15, %v279_v55 }
  0xeb   : > { %5068 = vst [vmem:[#allocation24_spill] sm:$0xff] %v2871_v9 }
  0xec   : > { %v786_v3 = vadd.f32 %v785_v13, %v643_v0  ;;  %v646_v0 = vmul.f32 %v2855_v29, %v2855_v29  ;;  %v647_v55 = vmul.f32 %v2865_v40, %v2865_v40  ;;  %5070 = vst [vmem:[#allocation26_spill] sm:$0xff] %v2887_v25 }
  0xee   : > { %v787_v63 = vadd.f32 %v786_v3, %v644_v52  ;;  %v283_v3 = vld [vmem:[%s4929_s2 + $0x198] sm:$0xff] }
  0xef   : > { %v2895_v10 = vmul.f32 %v2477_v27, %v283_v3  ;;  %v286_v3 = vld [vmem:[%s4929_s2 + $0x1b0] sm:$0xff] }
  0xf0   : > { %v788_v13 = vadd.f32 %v787_v63, %v645_v34  ;;  %v648_v34 = vmul.f32 %v2871_v9, %v2871_v9  ;;  %v2911_v9 = vmul.f32 %v2484_v30, %v285_v12  ;;  %v288_v12 = vld [vmem:[%s4929_s2 + $0x1c0] sm:$0xff] }
  0xf1   : > { %5071 = vst [vmem:[#allocation27_spill] sm:$0xff] %v2895_v10 }
  0xf2   : > { %v789_v52 = vadd.f32 %v788_v13, %v646_v0  ;;  %v649_v0 = vmul.f32 %v2879_v5, %v2879_v5  ;;  %5073 = vst [vmem:[#allocation29_spill] sm:$0xff] %v2911_v9  ;;  %v652_v5 = vmul.f32 %v2903_v57, %v2903_v57  ;;  %v2935_v57 = vmul.f32 %v2509_v43, %v288_v12  ;;  %v291_v12 = vld [vmem:[%s4929_s2 + $0x1d8] sm:$0xff] }
  0xf4   : > { %v790_v63 = vadd.f32 %v789_v52, %v647_v55  ;;  %v650_v55 = vmul.f32 %v2887_v25, %v2887_v25  ;;  %v653_v25 = vmul.f32 %v2911_v9, %v2911_v9  ;;  %5076 = vst [vmem:[#allocation32_spill] sm:$0xff] %v2935_v57  ;;  %v656_v9 = vmul.f32 %v2935_v57, %v2935_v57 }
  0xf6   : > { %v791_v13 = vadd.f32 %v790_v63, %v648_v34  ;;  %v651_v34 = vmul.f32 %v2895_v10, %v2895_v10  ;;  %v289_v10 = vld [vmem:[%s4929_s2 + $0x1c8] sm:$0xff] }
  0xf8   : > { %v792_v52 = vadd.f32 %v791_v13, %v649_v0  ;;  %v2921_v0 = vmul.f32 %v2489_v32, %v286_v3 }
  0xfa   : > { %v793_v63 = vadd.f32 %v792_v52, %v650_v55  ;;  %5074 = vst [vmem:[#allocation30_spill] sm:$0xff] %v2921_v0  ;;  %v2929_v55 = vmul.f32 %v2507_v41, %v287_v2  ;;  %v654_v3 = vmul.f32 %v2921_v0, %v2921_v0  ;;  %v292_v0 = vld [vmem:[%s4929_s2 + $0x1e0] sm:$0xff] }
  0xfc   : > { %v794_v13 = vadd.f32 %v793_v63, %v651_v34  ;;  %5075 = vst [vmem:[#allocation31_spill] sm:$0xff] %v2929_v55  ;;  %v290_v63 = vld [vmem:[%s4929_s2 + $0x1d0] sm:$0xff]  ;;  %v655_v2 = vmul.f32 %v2929_v55, %v2929_v55  ;;  %v2959_v55 = vmul.f32 %v2542_v58, %v291_v12 }
  0xfd   : > { %v294_v12 = vld [vmem:[%s4929_s2 + $0x1f0] sm:$0xff] }
  0xfe   : > { %v795_v52 = vadd.f32 %v794_v13, %v652_v5  ;;  %v2945_v5 = vmul.f32 %v2511_v44, %v289_v10  ;;  %5079 = vst [vmem:[#allocation35_spill] sm:$0xff] %v2959_v55  ;;  %v659_v37 = vmul.f32 %v2959_v55, %v2959_v55  ;;  %v314_v55 = vld [vmem:[%s4929_s2 + $0x290] sm:$0xff] }
 0x100   : > { %v796_v34 = vadd.f32 %v795_v52, %v653_v25  ;;  %5077 = vst [vmem:[#allocation33_spill] sm:$0xff] %v2945_v5  ;;  %v2953_v25 = vmul.f32 %v2532_v54, %v290_v63  ;;  %v657_v10 = vmul.f32 %v2945_v5, %v2945_v5  ;;  %v2983_v5 = vmul.f32 %v2583_v14, %v294_v12  ;;  %v297_v12 = vld [vmem:[%s4929_s2 + $0x208] sm:$0xff] }
 0x101   : > { %v3007_v51 = vmul.f32 %v2461_v21, %v297_v12  ;;  %v300_v12 = vld [vmem:[%s4929_s2 + $0x220] sm:$0xff] }
 0x102   : > { %v797_v13 = vadd.f32 %v796_v34, %v654_v3  ;;  %5078 = vst [vmem:[#allocation34_spill] sm:$0xff] %v2953_v25  ;;  %v293_v34 = vld [vmem:[%s4929_s2 + $0x1e8] sm:$0xff]  ;;  %v658_v63 = vmul.f32 %v2953_v25, %v2953_v25  ;;  %v3031_v45 = vmul.f32 %v2456_v19, %v300_v12  ;;  %v303_v12 = vld [vmem:[%s4929_s2 + $0x238] sm:$0xff] }
 0x103   : > { %5081 = vst [vmem:[#allocation37_spill] sm:$0xff] %v3007_v51 }
 0x104   : > { %v798_v52 = vadd.f32 %v797_v13, %v655_v2  ;;  %v2969_v2 = vmul.f32 %v2544_v59, %v292_v0  ;;  %5084 = vst [vmem:[#allocation40_spill] sm:$0xff] %v3031_v45 }
 0x106   : > { %v799_v3 = vadd.f32 %v798_v52, %v656_v9  ;;  %v2977_v9 = vmul.f32 %v2579_v11, %v293_v34  ;;  %v660_v0 = vmul.f32 %v2969_v2, %v2969_v2 }
 0x108   : > { %v800_v13 = vadd.f32 %v799_v3, %v657_v10  ;;  %v296_v3 = vld [vmem:[%s4929_s2 + $0x200] sm:$0xff]  ;;  %v661_v34 = vmul.f32 %v2977_v9, %v2977_v9 }
 0x109   : > { %v2999_v57 = vmul.f32 %v2452_v17, %v296_v3  ;;  %v3015_v3 = vmul.f32 %v2454_v18, %v298_v49  ;;  %v301_v49 = vld [vmem:[%s4929_s2 + $0x228] sm:$0xff] }
 0x10a   : > { %v801_v52 = vadd.f32 %v800_v13, %v658_v63  ;;  %v2993_v63 = vmul.f32 %v2585_v15, %v295_v26 }
 0x10b   : > { %5080 = vst [vmem:[#allocation36_spill] sm:$0xff] %v2999_v57 }
 0x10c   : > { %v802_v10 = vadd.f32 %v801_v52, %v659_v37  ;;  %v662_v37 = vmul.f32 %v2983_v5, %v2983_v5  ;;  %v663_v26 = vmul.f32 %v2993_v63, %v2993_v63  ;;  %5082 = vst [vmem:[#allocation38_spill] sm:$0xff] %v3015_v3 }
 0x10e   : > { %v803_v13 = vadd.f32 %v802_v10, %v660_v0  ;;  %v299_v10 = vld [vmem:[%s4929_s2 + $0x218] sm:$0xff] }
 0x10f   : > { %v3023_v53 = vmul.f32 %v2477_v27, %v299_v10  ;;  %v302_v10 = vld [vmem:[%s4929_s2 + $0x230] sm:$0xff] }
 0x110   : > { %v804_v52 = vadd.f32 %v803_v13, %v661_v34  ;;  %v664_v34 = vmul.f32 %v2999_v57, %v2999_v57  ;;  %v3039_v57 = vmul.f32 %v2484_v30, %v301_v49  ;;  %v304_v49 = vld [vmem:[%s4929_s2 + $0x240] sm:$0xff] }
 0x111   : > { %5083 = vst [vmem:[#allocation39_spill] sm:$0xff] %v3023_v53 }
 0x112   : > { %v805_v0 = vadd.f32 %v804_v52, %v662_v37  ;;  %v665_v37 = vmul.f32 %v3007_v51, %v3007_v51  ;;  %5085 = vst [vmem:[#allocation41_spill] sm:$0xff] %v3039_v57  ;;  %v668_v51 = vmul.f32 %v3031_v45, %v3031_v45  ;;  %v3063_v45 = vmul.f32 %v2509_v43, %v304_v49  ;;  %v307_v49 = vld [vmem:[%s4929_s2 + $0x258] sm:$0xff] }
 0x114   : > { %v806_v13 = vadd.f32 %v805_v0, %v663_v26  ;;  %v666_v26 = vmul.f32 %v3015_v3, %v3015_v3  ;;  %v669_v3 = vmul.f32 %v3039_v57, %v3039_v57  ;;  %5088 = vst [vmem:[#allocation44_spill] sm:$0xff] %v3063_v45  ;;  %v672_v57 = vmul.f32 %v3063_v45, %v3063_v45 }
 0x116   : > { %v807_v52 = vadd.f32 %v806_v13, %v664_v34  ;;  %v667_v34 = vmul.f32 %v3023_v53, %v3023_v53  ;;  %v305_v53 = vld [vmem:[%s4929_s2 + $0x248] sm:$0xff] }
 0x118   : > { %v808_v0 = vadd.f32 %v807_v52, %v665_v37  ;;  %v3049_v37 = vmul.f32 %v2489_v32, %v302_v10 }
 0x11a   : > { %v809_v13 = vadd.f32 %v808_v0, %v666_v26  ;;  %5086 = vst [vmem:[#allocation42_spill] sm:$0xff] %v3049_v37  ;;  %v3057_v26 = vmul.f32 %v2507_v41, %v303_v12  ;;  %v670_v10 = vmul.f32 %v3049_v37, %v3049_v37  ;;  %v308_v37 = vld [vmem:[%s4929_s2 + $0x260] sm:$0xff] }
 0x11c   : > { %v810_v52 = vadd.f32 %v809_v13, %v667_v34  ;;  %5087 = vst [vmem:[#allocation43_spill] sm:$0xff] %v3057_v26  ;;  %v306_v13 = vld [vmem:[%s4929_s2 + $0x250] sm:$0xff]  ;;  %v671_v12 = vmul.f32 %v3057_v26, %v3057_v26  ;;  %v3087_v26 = vmul.f32 %v2542_v58, %v307_v49 }
 0x11d   : > { %v310_v49 = vld [vmem:[%s4929_s2 + $0x270] sm:$0xff] }
 0x11e   : > { %v811_v0 = vadd.f32 %v810_v52, %v668_v51  ;;  %v3073_v51 = vmul.f32 %v2511_v44, %v305_v53  ;;  %5091 = vst [vmem:[#allocation47_spill] sm:$0xff] %v3087_v26  ;;  %v675_v45 = vmul.f32 %v3087_v26, %v3087_v26 }
 0x120   : > { %v812_v34 = vadd.f32 %v811_v0, %v669_v3  ;;  %5089 = vst [vmem:[#allocation45_spill] sm:$0xff] %v3073_v51  ;;  %v3081_v3 = vmul.f32 %v2532_v54, %v306_v13  ;;  %v673_v53 = vmul.f32 %v3073_v51, %v3073_v51  ;;  %v311_v51 = vld [vmem:[%s4929_s2 + $0x278] sm:$0xff] }
 0x122   : > { %v813_v52 = vadd.f32 %v812_v34, %v670_v10  ;;  %5090 = vst [vmem:[#allocation46_spill] sm:$0xff] %v3081_v3  ;;  %v309_v34 = vld [vmem:[%s4929_s2 + $0x268] sm:$0xff]  ;;  %v674_v13 = vmul.f32 %v3081_v3, %v3081_v3  ;;  %v3111_v3 = vmul.f32 %v2583_v14, %v310_v49 }
 0x123   : > { %v313_v49 = vld [vmem:[%s4929_s2 + $0x288] sm:$0xff] }
 0x124   : > { %v814_v0 = vadd.f32 %v813_v52, %v671_v12  ;;  %v3097_v12 = vmul.f32 %v2544_v59, %v308_v37  ;;  %v3135_v25 = vmul.f32 %v2461_v21, %v313_v49  ;;  %v316_v49 = vld [vmem:[%s4929_s2 + $0x2a0] sm:$0xff] }
 0x125   : > { %v3159_v16 = vmul.f32 %v2456_v19, %v316_v49  ;;  %v319_v49 = vld [vmem:[%s4929_s2 + $0x2b8] sm:$0xff] }
 0x126   : > { %v815_v10 = vadd.f32 %v814_v0, %v672_v57  ;;  %v3105_v57 = vmul.f32 %v2579_v11, %v309_v34  ;;  %v676_v37 = vmul.f32 %v3097_v12, %v3097_v12  ;;  %5093 = vst [vmem:[#allocation49_spill] sm:$0xff] %v3135_v25 }
 0x127   : > { %5096 = vst [vmem:[#allocation52_spill] sm:$0xff] %v3159_v16 }
 0x128   : > { %v816_v52 = vadd.f32 %v815_v10, %v673_v53  ;;  %v312_v10 = vld [vmem:[%s4929_s2 + $0x280] sm:$0xff]  ;;  %v677_v34 = vmul.f32 %v3105_v57, %v3105_v57 }
 0x129   : > { %v3127_v26 = vmul.f32 %v2452_v17, %v312_v10  ;;  %v3143_v10 = vmul.f32 %v2454_v18, %v314_v55  ;;  %v317_v55 = vld [vmem:[%s4929_s2 + $0x2a8] sm:$0xff] }
 0x12a   : > { %v817_v0 = vadd.f32 %v816_v52, %v674_v13  ;;  %v3121_v13 = vmul.f32 %v2585_v15, %v311_v51 }
 0x12b   : > { %5092 = vst [vmem:[#allocation48_spill] sm:$0xff] %v3127_v26 }
 0x12c   : > { %v818_v53 = vadd.f32 %v817_v0, %v675_v45  ;;  %v678_v45 = vmul.f32 %v3111_v3, %v3111_v3  ;;  %v679_v51 = vmul.f32 %v3121_v13, %v3121_v13  ;;  %5094 = vst [vmem:[#allocation50_spill] sm:$0xff] %v3143_v10 }
 0x12e   : > { %v819_v52 = vadd.f32 %v818_v53, %v676_v37  ;;  %v315_v53 = vld [vmem:[%s4929_s2 + $0x298] sm:$0xff] }
 0x12f   : > { %v3151_v39 = vmul.f32 %v2477_v27, %v315_v53  ;;  %v318_v53 = vld [vmem:[%s4929_s2 + $0x2b0] sm:$0xff] }
 0x130   : > { %v820_v0 = vadd.f32 %v819_v52, %v677_v34  ;;  %v680_v34 = vmul.f32 %v3127_v26, %v3127_v26  ;;  %v3167_v26 = vmul.f32 %v2484_v30, %v317_v55  ;;  %v320_v55 = vld [vmem:[%s4929_s2 + $0x2c0] sm:$0xff] }
 0x131   : > { %5095 = vst [vmem:[#allocation51_spill] sm:$0xff] %v3151_v39 }
 0x132   : > { %v821_v37 = vadd.f32 %v820_v0, %v678_v45  ;;  %v681_v45 = vmul.f32 %v3135_v25, %v3135_v25  ;;  %5097 = vst [vmem:[#allocation53_spill] sm:$0xff] %v3167_v26  ;;  %v684_v25 = vmul.f32 %v3159_v16, %v3159_v16  ;;  %v3191_v16 = vmul.f32 %v2509_v43, %v320_v55  ;;  %v323_v55 = vld [vmem:[%s4929_s2 + $0x2d8] sm:$0xff] }
 0x134   : > { %v822_v52 = vadd.f32 %v821_v37, %v679_v51  ;;  %v682_v51 = vmul.f32 %v3143_v10, %v3143_v10  ;;  %v685_v10 = vmul.f32 %v3167_v26, %v3167_v26  ;;  %5100 = vst [vmem:[#allocation56_spill] sm:$0xff] %v3191_v16  ;;  %v688_v26 = vmul.f32 %v3191_v16, %v3191_v16 }
 0x136   : > { %v823_v0 = vadd.f32 %v822_v52, %v680_v34  ;;  %v683_v34 = vmul.f32 %v3151_v39, %v3151_v39  ;;  %v321_v39 = vld [vmem:[%s4929_s2 + $0x2c8] sm:$0xff] }
 0x138   : > { %v824_v37 = vadd.f32 %v823_v0, %v681_v45  ;;  %v3177_v45 = vmul.f32 %v2489_v32, %v318_v53 }
 0x13a   : > { %v825_v52 = vadd.f32 %v824_v37, %v682_v51  ;;  %5098 = vst [vmem:[#allocation54_spill] sm:$0xff] %v3177_v45  ;;  %v3185_v51 = vmul.f32 %v2507_v41, %v319_v49  ;;  %v686_v53 = vmul.f32 %v3177_v45, %v3177_v45  ;;  %v324_v45 = vld [vmem:[%s4929_s2 + $0x2e0] sm:$0xff] }
 0x13c   : > { %v826_v0 = vadd.f32 %v825_v52, %v683_v34  ;;  %5099 = vst [vmem:[#allocation55_spill] sm:$0xff] %v3185_v51  ;;  %v322_v52 = vld [vmem:[%s4929_s2 + $0x2d0] sm:$0xff]  ;;  %v687_v49 = vmul.f32 %v3185_v51, %v3185_v51  ;;  %v3215_v51 = vmul.f32 %v2542_v58, %v323_v55 }
 0x13d   : > { %v326_v55 = vld [vmem:[%s4929_s2 + $0x2f0] sm:$0xff] }
 0x13e   : > { %v827_v37 = vadd.f32 %v826_v0, %v684_v25  ;;  %v3201_v25 = vmul.f32 %v2511_v44, %v321_v39  ;;  %5103 = vst [vmem:[#allocation59_spill] sm:$0xff] %v3215_v51  ;;  %v691_v16 = vmul.f32 %v3215_v51, %v3215_v51 }
 0x140   : > { %v828_v34 = vadd.f32 %v827_v37, %v685_v10  ;;  %5101 = vst [vmem:[#allocation57_spill] sm:$0xff] %v3201_v25  ;;  %v3209_v10 = vmul.f32 %v2532_v54, %v322_v52  ;;  %v689_v39 = vmul.f32 %v3201_v25, %v3201_v25  ;;  %v327_v25 = vld [vmem:[%s4929_s2 + $0x2f8] sm:$0xff] }
 0x142   : > { %v829_v0 = vadd.f32 %v828_v34, %v686_v53  ;;  %5102 = vst [vmem:[#allocation58_spill] sm:$0xff] %v3209_v10  ;;  %v325_v34 = vld [vmem:[%s4929_s2 + $0x2e8] sm:$0xff]  ;;  %v690_v52 = vmul.f32 %v3209_v10, %v3209_v10  ;;  %v3239_v10 = vmul.f32 %v2583_v14, %v326_v55 }
 0x143   : > { %v329_v55 = vld [vmem:[%s4929_s2 + $0x308] sm:$0xff] }
 0x144   : > { %v830_v37 = vadd.f32 %v829_v0, %v687_v49  ;;  %v3225_v49 = vmul.f32 %v2544_v59, %v324_v45  ;;  %5106 = vst [vmem:[#allocation62_spill] sm:$0xff] %v3239_v10 }
 0x146   : > { %v831_v53 = vadd.f32 %v830_v37, %v688_v26  ;;  %5104 = vst [vmem:[#allocation60_spill] sm:$0xff] %v3225_v49  ;;  %v3233_v26 = vmul.f32 %v2579_v11, %v325_v34  ;;  %v692_v45 = vmul.f32 %v3225_v49, %v3225_v49  ;;  %v330_v49 = vld [vmem:[%s4929_s2 + $0x310] sm:$0xff] }
 0x148   : > { %v832_v0 = vadd.f32 %v831_v53, %v689_v39  ;;  %5105 = vst [vmem:[#allocation61_spill] sm:$0xff] %v3233_v26  ;;  %v328_v53 = vld [vmem:[%s4929_s2 + $0x300] sm:$0xff]  ;;  %v693_v34 = vmul.f32 %v3233_v26, %v3233_v26  ;;  %v3263_v26 = vmul.f32 %v2461_v21, %v329_v55 }
 0x149   : > { %v3255_v51 = vmul.f32 %v2452_v17, %v328_v53  ;;  %v3271_v53 = vmul.f32 %v2454_v18, %v330_v49  ;;  %v332_v55 = vld [vmem:[%s4929_s2 + $0x320] sm:$0xff]  ;;  %v333_v49 = vld [vmem:[%s4929_s2 + $0x328] sm:$0xff] }
 0x14a   : > { %v833_v37 = vadd.f32 %v832_v0, %v690_v52  ;;  %v3249_v52 = vmul.f32 %v2585_v15, %v327_v25  ;;  %5109 = vst [vmem:[#allocation65_spill] sm:$0xff] %v3263_v26 }
 0x14b   : > { %5108 = vst [vmem:[#allocation64_spill] sm:$0xff] %v3255_v51 }
 0x14c   : > { %v834_v39 = vadd.f32 %v833_v37, %v691_v16  ;;  %5107 = vst [vmem:[#allocation63_spill] sm:$0xff] %v3249_v52  ;;  %v694_v16 = vmul.f32 %v3239_v10, %v3239_v10  ;;  %v695_v25 = vmul.f32 %v3249_v52, %v3249_v52  ;;  %v3287_v52 = vmul.f32 %v2456_v19, %v332_v55  ;;  %v335_v55 = vld [vmem:[%s4929_s2 + $0x338] sm:$0xff] }
 0x14d   : > { %5110 = vst [vmem:[#allocation66_spill] sm:$0xff] %v3271_v53 }
 0x14e   : > { %v835_v0 = vadd.f32 %v834_v39, %v692_v45  ;;  %v331_v39 = vld [vmem:[%s4929_s2 + $0x318] sm:$0xff]  ;;  %5112 = vst [vmem:[#allocation68_spill] sm:$0xff] %v3287_v52 }
 0x14f   : > { %v3279_v10 = vmul.f32 %v2477_v27, %v331_v39  ;;  %v334_v39 = vld [vmem:[%s4929_s2 + $0x330] sm:$0xff] }
 0x150   : > { %v836_v37 = vadd.f32 %v835_v0, %v693_v34  ;;  %v696_v34 = vmul.f32 %v3255_v51, %v3255_v51  ;;  %v3295_v51 = vmul.f32 %v2484_v30, %v333_v49  ;;  %v336_v49 = vld [vmem:[%s4929_s2 + $0x340] sm:$0xff] }
 0x151   : > { %5111 = vst [vmem:[#allocation67_spill] sm:$0xff] %v3279_v10 }
 0x152   : > { %v837_v45 = vadd.f32 %v836_v37, %v694_v16  ;;  %v697_v16 = vmul.f32 %v3263_v26, %v3263_v26  ;;  %5113 = vst [vmem:[#allocation69_spill] sm:$0xff] %v3295_v51  ;;  %v700_v26 = vmul.f32 %v3287_v52, %v3287_v52  ;;  %v3319_v52 = vmul.f32 %v2509_v43, %v336_v49  ;;  %v339_v49 = vld [vmem:[%s4929_s2 + $0x358] sm:$0xff] }
 0x154   : > { %v838_v0 = vadd.f32 %v837_v45, %v695_v25  ;;  %v698_v25 = vmul.f32 %v3271_v53, %v3271_v53  ;;  %v701_v53 = vmul.f32 %v3295_v51, %v3295_v51  ;;  %5116 = vst [vmem:[#allocation72_spill] sm:$0xff] %v3319_v52  ;;  %v704_v51 = vmul.f32 %v3319_v52, %v3319_v52 }
 0x156   : > { %v839_v37 = vadd.f32 %v838_v0, %v696_v34  ;;  %v699_v34 = vmul.f32 %v3279_v10, %v3279_v10  ;;  %v337_v10 = vld [vmem:[%s4929_s2 + $0x348] sm:$0xff] }
 0x158   : > { %v840_v45 = vadd.f32 %v839_v37, %v697_v16  ;;  %v3305_v16 = vmul.f32 %v2489_v32, %v334_v39 }
 0x15a   : > { %v841_v0 = vadd.f32 %v840_v45, %v698_v25  ;;  %5114 = vst [vmem:[#allocation70_spill] sm:$0xff] %v3305_v16  ;;  %v3313_v25 = vmul.f32 %v2507_v41, %v335_v55  ;;  %v702_v39 = vmul.f32 %v3305_v16, %v3305_v16  ;;  %v340_v16 = vld [vmem:[%s4929_s2 + $0x360] sm:$0xff] }
 0x15c   : > { %v842_v37 = vadd.f32 %v841_v0, %v699_v34  ;;  %5115 = vst [vmem:[#allocation71_spill] sm:$0xff] %v3313_v25  ;;  %v338_v0 = vld [vmem:[%s4929_s2 + $0x350] sm:$0xff]  ;;  %v703_v55 = vmul.f32 %v3313_v25, %v3313_v25  ;;  %v3343_v25 = vmul.f32 %v2542_v58, %v339_v49 }
 0x15d   : > { %v342_v49 = vld [vmem:[%s4929_s2 + $0x370] sm:$0xff] }
 0x15e   : > { %v843_v45 = vadd.f32 %v842_v37, %v700_v26  ;;  %v3329_v26 = vmul.f32 %v2511_v44, %v337_v10  ;;  %5119 = vst [vmem:[#allocation75_spill] sm:$0xff] %v3343_v25  ;;  %v707_v52 = vmul.f32 %v3343_v25, %v3343_v25 }
 0x160   : > { %v844_v34 = vadd.f32 %v843_v45, %v701_v53  ;;  %5117 = vst [vmem:[#allocation73_spill] sm:$0xff] %v3329_v26  ;;  %v3337_v53 = vmul.f32 %v2532_v54, %v338_v0  ;;  %v705_v10 = vmul.f32 %v3329_v26, %v3329_v26  ;;  %v343_v26 = vld [vmem:[%s4929_s2 + $0x378] sm:$0xff] }
 0x162   : > { %v845_v37 = vadd.f32 %v844_v34, %v702_v39  ;;  %5118 = vst [vmem:[#allocation74_spill] sm:$0xff] %v3337_v53  ;;  %v341_v34 = vld [vmem:[%s4929_s2 + $0x368] sm:$0xff]  ;;  %v706_v0 = vmul.f32 %v3337_v53, %v3337_v53  ;;  %v3367_v53 = vmul.f32 %v2583_v14, %v342_v49 }
 0x163   : > { %v345_v49 = vld [vmem:[%s4929_s2 + $0x388] sm:$0xff] }
 0x164   : > { %v846_v45 = vadd.f32 %v845_v37, %v703_v55  ;;  %v3353_v55 = vmul.f32 %v2544_v59, %v340_v16  ;;  %5122 = vst [vmem:[#allocation78_spill] sm:$0xff] %v3367_v53 }
 0x166   : > { %v847_v39 = vadd.f32 %v846_v45, %v704_v51  ;;  %5120 = vst [vmem:[#allocation76_spill] sm:$0xff] %v3353_v55  ;;  %v3361_v51 = vmul.f32 %v2579_v11, %v341_v34  ;;  %v708_v16 = vmul.f32 %v3353_v55, %v3353_v55  ;;  %v346_v55 = vld [vmem:[%s4929_s2 + $0x390] sm:$0xff] }
 0x168   : > { %v848_v37 = vadd.f32 %v847_v39, %v705_v10  ;;  %5121 = vst [vmem:[#allocation77_spill] sm:$0xff] %v3361_v51  ;;  %v344_v39 = vld [vmem:[%s4929_s2 + $0x380] sm:$0xff]  ;;  %v709_v34 = vmul.f32 %v3361_v51, %v3361_v51  ;;  %v3391_v51 = vmul.f32 %v2461_v21, %v345_v49 }
 0x169   : > { %v3383_v25 = vmul.f32 %v2452_v17, %v344_v39  ;;  %v3399_v39 = vmul.f32 %v2454_v18, %v346_v55  ;;  %v348_v49 = vld [vmem:[%s4929_s2 + $0x3a0] sm:$0xff]  ;;  %v349_v55 = vld [vmem:[%s4929_s2 + $0x3a8] sm:$0xff] }
 0x16a   : > { %v849_v45 = vadd.f32 %v848_v37, %v706_v0  ;;  %v3377_v0 = vmul.f32 %v2585_v15, %v343_v26  ;;  %5125 = vst [vmem:[#allocation81_spill] sm:$0xff] %v3391_v51 }
 0x16b   : > { %5124 = vst [vmem:[#allocation80_spill] sm:$0xff] %v3383_v25 }
 0x16c   : > { %v850_v10 = vadd.f32 %v849_v45, %v707_v52  ;;  %5123 = vst [vmem:[#allocation79_spill] sm:$0xff] %v3377_v0  ;;  %v710_v52 = vmul.f32 %v3367_v53, %v3367_v53  ;;  %v711_v26 = vmul.f32 %v3377_v0, %v3377_v0  ;;  %v3415_v0 = vmul.f32 %v2456_v19, %v348_v49  ;;  %v351_v49 = vld [vmem:[%s4929_s2 + $0x3b8] sm:$0xff] }
 0x16d   : > { %5126 = vst [vmem:[#allocation82_spill] sm:$0xff] %v3399_v39 }
 0x16e   : > { %v851_v37 = vadd.f32 %v850_v10, %v708_v16  ;;  %v347_v10 = vld [vmem:[%s4929_s2 + $0x398] sm:$0xff]  ;;  %5128 = vst [vmem:[#allocation84_spill] sm:$0xff] %v3415_v0 }
 0x16f   : > { %v3407_v53 = vmul.f32 %v2477_v27, %v347_v10  ;;  %v350_v10 = vld [vmem:[%s4929_s2 + $0x3b0] sm:$0xff] }
 0x170   : > { %v852_v45 = vadd.f32 %v851_v37, %v709_v34  ;;  %v712_v34 = vmul.f32 %v3383_v25, %v3383_v25  ;;  %v3423_v25 = vmul.f32 %v2484_v30, %v349_v55  ;;  %v352_v55 = vld [vmem:[%s4929_s2 + $0x3c0] sm:$0xff] }
 0x171   : > { %5127 = vst [vmem:[#allocation83_spill] sm:$0xff] %v3407_v53 }
 0x172   : > { %v853_v16 = vadd.f32 %v852_v45, %v710_v52  ;;  %v713_v52 = vmul.f32 %v3391_v51, %v3391_v51  ;;  %5129 = vst [vmem:[#allocation85_spill] sm:$0xff] %v3423_v25  ;;  %v716_v51 = vmul.f32 %v3415_v0, %v3415_v0  ;;  %v3447_v0 = vmul.f32 %v2509_v43, %v352_v55  ;;  %v355_v55 = vld [vmem:[%s4929_s2 + $0x3d8] sm:$0xff] }
 0x174   : > { %v854_v37 = vadd.f32 %v853_v16, %v711_v26  ;;  %v714_v26 = vmul.f32 %v3399_v39, %v3399_v39  ;;  %v717_v39 = vmul.f32 %v3423_v25, %v3423_v25  ;;  %5132 = vst [vmem:[#allocation88_spill] sm:$0xff] %v3447_v0  ;;  %v720_v25 = vmul.f32 %v3447_v0, %v3447_v0 }
 0x176   : > { %v855_v45 = vadd.f32 %v854_v37, %v712_v34  ;;  %v715_v34 = vmul.f32 %v3407_v53, %v3407_v53  ;;  %v353_v53 = vld [vmem:[%s4929_s2 + $0x3c8] sm:$0xff] }
 0x178   : > { %v856_v16 = vadd.f32 %v855_v45, %v713_v52  ;;  %v3433_v52 = vmul.f32 %v2489_v32, %v350_v10 }
 0x17a   : > { %v857_v37 = vadd.f32 %v856_v16, %v714_v26  ;;  %5130 = vst [vmem:[#allocation86_spill] sm:$0xff] %v3433_v52  ;;  %v3441_v26 = vmul.f32 %v2507_v41, %v351_v49  ;;  %v718_v10 = vmul.f32 %v3433_v52, %v3433_v52  ;;  %v356_v52 = vld [vmem:[%s4929_s2 + $0x3e0] sm:$0xff] }
 0x17c   : > { %v858_v45 = vadd.f32 %v857_v37, %v715_v34  ;;  %5131 = vst [vmem:[#allocation87_spill] sm:$0xff] %v3441_v26  ;;  %v354_v37 = vld [vmem:[%s4929_s2 + $0x3d0] sm:$0xff]  ;;  %v719_v49 = vmul.f32 %v3441_v26, %v3441_v26  ;;  %v3471_v26 = vmul.f32 %v2542_v58, %v355_v55 }
 0x17d   : > { %v358_v55 = vld [vmem:[%s4929_s2 + $0x3f0] sm:$0xff] }
 0x17e   : > { %v859_v16 = vadd.f32 %v858_v45, %v716_v51  ;;  %v3457_v51 = vmul.f32 %v2511_v44, %v353_v53  ;;  %5135 = vst [vmem:[#allocation91_spill] sm:$0xff] %v3471_v26  ;;  %v723_v0 = vmul.f32 %v3471_v26, %v3471_v26 }
 0x180   : > { %v860_v34 = vadd.f32 %v859_v16, %v717_v39  ;;  %5133 = vst [vmem:[#allocation89_spill] sm:$0xff] %v3457_v51  ;;  %v3465_v39 = vmul.f32 %v2532_v54, %v354_v37  ;;  %v721_v53 = vmul.f32 %v3457_v51, %v3457_v51  ;;  %v359_v51 = vld [vmem:[%s4929_s2 + $0x3f8] sm:$0xff] }
 0x182   : > { %v861_v45 = vadd.f32 %v860_v34, %v718_v10  ;;  %5134 = vst [vmem:[#allocation90_spill] sm:$0xff] %v3465_v39  ;;  %v357_v34 = vld [vmem:[%s4929_s2 + $0x3e8] sm:$0xff]  ;;  %v722_v37 = vmul.f32 %v3465_v39, %v3465_v39  ;;  %v3495_v39 = vmul.f32 %v2583_v14, %v358_v55 }
 0x183   : > { %v361_v55 = vld [vmem:[%s4929_s2 + $0x408] sm:$0xff] }
 0x184   : > { %v862_v16 = vadd.f32 %v861_v45, %v719_v49  ;;  %v3481_v49 = vmul.f32 %v2544_v59, %v356_v52 }
 0x186   : > { %v863_v10 = vadd.f32 %v862_v16, %v720_v25  ;;  %5136 = vst [vmem:[#allocation92_spill] sm:$0xff] %v3481_v49  ;;  %v3489_v25 = vmul.f32 %v2579_v11, %v357_v34  ;;  %v724_v52 = vmul.f32 %v3481_v49, %v3481_v49  ;;  %v362_v49 = vld [vmem:[%s4929_s2 + $0x410] sm:$0xff] }
 0x188   : > { %v864_v45 = vadd.f32 %v863_v10, %v721_v53  ;;  %5137 = vst [vmem:[#allocation93_spill] sm:$0xff] %v3489_v25  ;;  %v360_v10 = vld [vmem:[%s4929_s2 + $0x400] sm:$0xff]  ;;  %v725_v34 = vmul.f32 %v3489_v25, %v3489_v25  ;;  %v3519_v25 = vmul.f32 %v2461_v21, %v361_v55 }
 0x189   : > { %v3511_v26 = vmul.f32 %v2452_v17, %v360_v10  ;;  %v363_v17 = vld [vmem:[%s4929_s2 + $0x418] sm:$0xff]  ;;  %v364_v21 = vld [vmem:[%s4929_s2 + $0x420] sm:$0xff] }
 0x18a   : > { %v865_v16 = vadd.f32 %v864_v45, %v722_v37  ;;  %v3505_v37 = vmul.f32 %v2585_v15, %v359_v51  ;;  %5139 = vst [vmem:[#allocation95_spill] sm:$0xff] %v3519_v25  ;;  %v729_v55 = vmul.f32 %v3519_v25, %v3519_v25 }
 0x18b   : > { %5138 = vst [vmem:[#allocation94_spill] sm:$0xff] %v3511_v26  ;;  %v728_v10 = vmul.f32 %v3511_v26, %v3511_v26 }
 0x18c   : > { %v866_v53 = vadd.f32 %v865_v16, %v723_v0  ;;  %v726_v0 = vmul.f32 %v3495_v39, %v3495_v39  ;;  %v727_v51 = vmul.f32 %v3505_v37, %v3505_v37 }
 0x18e   : > { %v867_v45 = vadd.f32 %v866_v53, %v724_v52  ;;  %v3527_v53 = vmul.f32 %v2454_v18, %v362_v49  ;;  %v365_v18 = vld [vmem:[%s4929_s2 + $0x428] sm:$0xff]  ;;  %v3543_v49 = vmul.f32 %v2456_v19, %v364_v21  ;;  %v367_v19 = vld [vmem:[%s4929_s2 + $0x438] sm:$0xff] }
 0x190   : > { %v868_v16 = vadd.f32 %v867_v45, %v725_v34  ;;  %5140 = vst [vmem:[#allocation96_spill] sm:$0xff] %v3527_v53  ;;  %v3535_v45 = vmul.f32 %v2477_v27, %v363_v17  ;;  %v366_v27 = vld [vmem:[%s4929_s2 + $0x430] sm:$0xff] }
 0x191   : > { %5142 = vst [vmem:[#allocation98_spill] sm:$0xff] %v3543_v49  ;;  %v3561_v21 = vmul.f32 %v2489_v32, %v366_v27 }
 0x192   : > { %v869_v52 = vadd.f32 %v868_v16, %v726_v0  ;;  %5141 = vst [vmem:[#allocation97_spill] sm:$0xff] %v3535_v45  ;;  %v730_v16 = vmul.f32 %v3527_v53, %v3527_v53  ;;  %v731_v17 = vmul.f32 %v3535_v45, %v3535_v45 }
 0x193   : > { %5144 = vst [vmem:[#allocation100_spill] sm:$0xff] %v3561_v21  ;;  %v734_v32 = vmul.f32 %v3561_v21, %v3561_v21 }
 0x194   : > { %v870_v34 = vadd.f32 %v869_v52, %v727_v51  ;;  %v3551_v52 = vmul.f32 %v2484_v30, %v365_v18  ;;  %v368_v30 = vld [vmem:[%s4929_s2 + $0x440] sm:$0xff]  ;;  %v3569_v18 = vmul.f32 %v2507_v41, %v367_v19 }
 0x195   : > { %v3575_v25 = vmul.f32 %v2509_v43, %v368_v30  ;;  %v371_v43 = vld [vmem:[%s4929_s2 + $0x458] sm:$0xff] }
 0x196   : > { %v871_v0 = vadd.f32 %v870_v34, %v728_v10  ;;  %5143 = vst [vmem:[#allocation99_spill] sm:$0xff] %v3551_v52  ;;  %v732_v34 = vmul.f32 %v3543_v49, %v3543_v49  ;;  %v735_v41 = vmul.f32 %v3569_v18, %v3569_v18 }
 0x197   : > { %5145 = vst [vmem:[#allocation101_spill] sm:$0xff] %v3569_v18 }
 0x198   : > { %v872_v51 = vadd.f32 %v871_v0, %v729_v55  ;;  %v733_v0 = vmul.f32 %v3551_v52, %v3551_v52  ;;  %5146 = vst [vmem:[#allocation102_spill] sm:$0xff] %v3575_v25 }
 0x19a   : > { %v873_v10 = vadd.f32 %v872_v51, %v730_v16  ;;  %v369_v51 = vld [vmem:[%s4929_s2 + $0x448] sm:$0xff] }
 0x19c   : > { %v874_v55 = vadd.f32 %v873_v10, %v731_v17  ;;  %v370_v17 = vld [vmem:[%s4929_s2 + $0x450] sm:$0xff]  ;;  %v3585_v10 = vmul.f32 %v2511_v44, %v369_v51 }
 0x19e   : > { %v875_v16 = vadd.f32 %v874_v55, %v732_v34  ;;  %5147 = vst [vmem:[#allocation103_spill] sm:$0xff] %v3585_v10  ;;  %v736_v34 = vmul.f32 %v3575_v25, %v3575_v25  ;;  %v3593_v55 = vmul.f32 %v2532_v54, %v370_v17  ;;  %v737_v44 = vmul.f32 %v3585_v10, %v3585_v10 }
 0x1a0   : > { %v876_v27 = vadd.f32 %v875_v16, %v733_v0  ;;  %5148 = vst [vmem:[#allocation104_spill] sm:$0xff] %v3593_v55  ;;  %v372_v0 = vld [vmem:[%s4929_s2 + $0x460] sm:$0xff]  ;;  %v3599_v16 = vmul.f32 %v2542_v58, %v371_v43  ;;  %v738_v54 = vmul.f32 %v3593_v55, %v3593_v55  ;;  %v374_v58 = vld [vmem:[%s4929_s2 + $0x470] sm:$0xff]  ;;  %v5189_v55 = vld [vmem:[#allocation5_spill] sm:$0xff] }
 0x1a2   : > { %v877_v19 = vadd.f32 %v876_v27, %v734_v32  ;;  %5149 = vst [vmem:[#allocation105_spill] sm:$0xff] %v3599_v16  ;;  %v373_v32 = vld [vmem:[%s4929_s2 + $0x468] sm:$0xff]  ;;  %v3609_v27 = vmul.f32 %v2544_v59, %v372_v0 }
 0x1a4   : > { %v878_v30 = vadd.f32 %v877_v19, %v735_v41  ;;  %5150 = vst [vmem:[#allocation106_spill] sm:$0xff] %v3609_v27  ;;  %v739_v41 = vmul.f32 %v3599_v16, %v3599_v16  ;;  %v3617_v19 = vmul.f32 %v2579_v11, %v373_v32  ;;  %v740_v59 = vmul.f32 %v3609_v27, %v3609_v27  ;;  %v5188_v16 = vld [vmem:[#allocation4_spill] sm:$0xff]  ;;  %v2250_v27 = vld [vmem:[%s3893_s9] sm:$0xff] }
 0x1a6   : > { %v879_v51 = vadd.f32 %v878_v30, %v736_v34  ;;  %5151 = vst [vmem:[#allocation107_spill] sm:$0xff] %v3617_v19  ;;  %v375_v34 = vld [vmem:[%s4929_s2 + $0x478] sm:$0xff]  ;;  %v3623_v30 = vmul.f32 %v2583_v14, %v374_v58 }
 0x1a8   : > { %v880_v17 = vadd.f32 %v879_v51, %v737_v44  ;;  %v741_v44 = vmul.f32 %v3617_v19, %v3617_v19  ;;  %v3630_v51 = vmul.f32 %v2585_v15, %v375_v34  ;;  %v742_v32 = vmul.f32 %v3623_v30, %v3623_v30 }
 0x1aa   : > { %v881_v43 = vadd.f32 %v880_v17, %v738_v54  ;;  %v743_v17 = vmul.f32 %v3630_v51, %v3630_v51 }
 0x1ac   : > { %v882_v0 = vadd.f32 %v881_v43, %v739_v41 }
 0x1ae   : > { %v883_v11 = vadd.f32 %v882_v0, %v740_v59 }
 0x1b0   : > { %v884_v54 = vadd.f32 %v883_v11, %v741_v44 }
 0x1b2   : > { %v885_v14 = vadd.f32 %v884_v54, %v742_v32 }
 0x1b4   : > { %v886_v58 = vadd.f32 %v885_v14, %v743_v17 }
 0x1b6   : > { %v887_v26 = vrot.slane %v886_v58, 4 }
 0x1b8   : > { %v888_v45 = vadd.f32 %v887_v26, %v886_v58 }
 0x1ba   : > { %v889_v53 = vrot.slane %v888_v45, 2 }
 0x1bc   : > { %v890_v41 = vadd.f32 %v889_v53, %v888_v45 }
 0x1be   : > { %v891_v43 = vrot.slane %v890_v41, 1 }
 0x1c0   : > { %v892_v52 = vadd.f32 %v891_v43, %v890_v41 }
 0x1c2   : > { %v893_v49 = vadd.f32 1e-08, %v892_v52 }
 0x1c4   : > { %2329 = vrsqrt.f32 %v893_v49  ;;  %vm900_vm1 = vweird.f32 %v893_v49 }
 0x1ca   : > { %v2330_v15 = vpop.eup %2329 }
 0x1cb   : > { %v895_v34 = vmul.f32 %v2330_v15, %v893_v49  ;;  %vm901_vm0 = vweird.f32 %v2330_v15 }
 0x1cc   : > { %vm902_vm2 = vmor %vm900_vm1, %vm901_vm0 }
 0x1cd   : > { %v896_v59 = vmul.f32 %v2330_v15, %v895_v34 }
 0x1cf   : > { %v897_v0 = vmul.f32 0.5, %v896_v59 }
 0x1d1   : > { %v898_v18 = vsub.f32 1.5, %v897_v0 }
 0x1d3   : > { %v899_v44 = vmul.f32 %v2330_v15, %v898_v18 }
 0x1d5   : > { %v3636_v11 = vsel %vm902_vm2, %v2330_v15, %v899_v44 }
 0x1d6   : > { %v918_v26 = vmul.f32 %v3636_v11, %v2601_v31  ;;  %v919_v53 = vmul.f32 %v3636_v11, %v2604_v33  ;;  %v916_v52 = vmul.f32 %v3636_v11, %v2574_v8  ;;  %v917_v32 = vmul.f32 %v3636_v11, %v2594_v22 }
 0x1d7   : > { %v914_v18 = vmul.f32 %v3636_v11, %v2566_v4  ;;  %v915_v49 = vmul.f32 %v3636_v11, %v2571_v7  ;;  %v912_v33 = vmul.f32 %v3636_v11, %v2547_v60  ;;  %v913_v8 = vmul.f32 %v3636_v11, %v2550_v62 }
 0x1d8   : > { %v1055_v45 = vpack.c.bf16 %v919_v53, %v918_v26  ;;  %v1054_v31 = vpack.c.bf16 %v917_v32, %v916_v52  ;;  %v910_v22 = vmul.f32 %v3636_v11, %v2524_v50  ;;  %v911_v4 = vmul.f32 %v3636_v11, %v2538_v56  ;;  %v5154_v26 = vld [vmem:[#allocation34_spill] sm:$0xff]  ;;  %v5155_v53 = vld [vmem:[#allocation35_spill] sm:$0xff] }
 0x1d9   : > { %v1053_v54 = vpack.c.bf16 %v915_v49, %v914_v18  ;;  %v908_v7 = vmul.f32 %v3636_v11, %v2500_v38  ;;  %v909_v17 = vmul.f32 %v3636_v11, %v2516_v46  ;;  %v906_v60 = vmul.f32 %v3636_v11, %v2480_v28  ;;  %v5157_v52 = vld [vmem:[#allocation47_spill] sm:$0xff]  ;;  %v5158_v18 = vld [vmem:[#allocation10_spill] sm:$0xff] }
 0x1da   : > { %1620 = vmatpush.bf16.msra.mxu0 %v1055_v45  ;;  %2260 = vmatpush.bf16.msra.mxu1 %v1055_v45  ;;  %v907_v62 = vmul.f32 %v3636_v11, %v2494_v35  ;;  %v904_v50 = vmul.f32 %v3636_v11, %v2470_v24  ;;  %v905_v56 = vmul.f32 %v3636_v11, %v2467_v23 }
 0x1db   : > { %2261 = vmatpush.bf16.msra.mxu2 %v1055_v45  ;;  %2262 = vmatpush.bf16.msra.mxu3 %v1055_v45  ;;  %v3672_v38 = vmul.f32 %v3636_v11, %v2727_v47  ;;  %v3676_v46 = vmul.f32 %v3636_v11, %v2737_v61  ;;  %v3680_v28 = vmul.f32 %v3636_v11, %v2855_v29  ;;  %v5156_v45 = vld [vmem:[#allocation46_spill] sm:$0xff] }
 0x1dc   : > { %v3684_v24 = vmul.f32 %v3636_v11, %v2865_v40  ;;  %v3688_v35 = vmul.f32 %v3636_v11, %v2983_v5  ;;  %v3692_v23 = vmul.f32 %v3636_v11, %v2993_v63  ;;  %v1052_v47 = vpack.c.bf16 %v913_v8, %v912_v33  ;;  %v5176_v8 = vld [vmem:[#allocation7_spill] sm:$0xff]  ;;  %v5178_v63 = vld [vmem:[#allocation16_spill] sm:$0xff]  ;;  %v5183_v40 = vld [vmem:[#allocation29_spill] sm:$0xff] }
 0x1dd   : > { %v1051_v61 = vpack.c.bf16 %v911_v4, %v910_v22  ;;  %v1050_v14 = vpack.c.bf16 %v909_v17, %v908_v7  ;;  %v3694_v29 = vpack.c.bf16 %v907_v62, %v906_v60  ;;  %v3696_v58 = vpack.c.bf16 %v905_v56, %v904_v50  ;;  %v5160_v22 = vld [vmem:[#allocation20_spill] sm:$0xff]  ;;  %v5161_v4 = vld [vmem:[#allocation21_spill] sm:$0xff]  ;;  %v5171_v56 = vld [vmem:[#allocation31_spill] sm:$0xff] }
 0x1de   : > { %1621 = vmatpush.bf16.msra.mxu0 %v1054_v31  ;;  %2263 = vmatpush.bf16.msra.mxu1 %v1054_v31  ;;  %v3706_v41 = vmul.f32 %v3636_v11, %v3111_v3  ;;  %v3710_v43 = vmul.f32 %v3636_v11, %v3121_v13  ;;  %v3714_v15 = vmul.f32 %v3636_v11, %v2713_v20  ;;  %v5172_v50 = vld [vmem:[#allocation42_spill] sm:$0xff]  ;;  %v5173_v62 = vld [vmem:[#allocation43_spill] sm:$0xff]  ;;  %v5181_v5 = vld [vmem:[#allocation28_spill] sm:$0xff] }
 0x1df   : > { %2264 = vmatpush.bf16.msra.mxu2 %v1054_v31  ;;  %2265 = vmatpush.bf16.msra.mxu3 %v1054_v31  ;;  %v3718_v34 = vmul.f32 %v3636_v11, %v2721_v36  ;;  %v3722_v59 = vmul.f32 %v3636_v11, %v2841_v48  ;;  %v3726_v3 = vmul.f32 %v3636_v11, %v2849_v42  ;;  %v5159_v31 = vld [vmem:[#allocation11_spill] sm:$0xff]  ;;  %v5174_v17 = vld [vmem:[#allocation6_spill] sm:$0xff] }
 0x1e0   : > { %v3730_v13 = vmul.f32 %v3636_v11, %v2969_v2  ;;  %v3734_v20 = vmul.f32 %v3636_v11, %v2977_v9  ;;  %v3738_v36 = vmul.f32 %v3636_v11, %v3097_v12  ;;  %v3742_v48 = vmul.f32 %v3636_v11, %v3105_v57  ;;  %v5152_v9 = vld [vmem:[#allocation22_spill] sm:$0xff]  ;;  %v5153_v12 = vld [vmem:[#allocation23_spill] sm:$0xff] }
 0x1e1   : > { %v3746_v42 = vmul.f32 %v3636_v11, %v2697_v1  ;;  %v3750_v2 = vmul.f32 %v3636_v11, %v2703_v6  ;;  %v3754_v0 = vmul.f32 %v3636_v11, %v5152_v9  ;;  %v3758_v44 = vmul.f32 %v3636_v11, %v5153_v12  ;;  %v5167_v9 = vld [vmem:[#allocation9_spill] sm:$0xff] }
 0x1e2   : > { %1622 = vmatpush.bf16.msra.mxu0 %v1053_v54  ;;  %2266 = vmatpush.bf16.msra.mxu1 %v1053_v54  ;;  %v3762_v57 = vmul.f32 %v3636_v11, %v5154_v26  ;;  %v3766_v1 = vmul.f32 %v3636_v11, %v5155_v53  ;;  %v3770_v6 = vmul.f32 %v3636_v11, %v5156_v45  ;;  %v5162_v26 = vld [vmem:[#allocation32_spill] sm:$0xff]  ;;  %v5163_v45 = vld [vmem:[#allocation33_spill] sm:$0xff] }
 0x1e3   : > { %2267 = vmatpush.bf16.msra.mxu2 %v1053_v54  ;;  %2268 = vmatpush.bf16.msra.mxu3 %v1053_v54  ;;  %v3774_v32 = vmul.f32 %v3636_v11, %v5157_v52  ;;  %v3778_v49 = vmul.f32 %v3636_v11, %v5158_v18  ;;  %v3782_v33 = vmul.f32 %v3636_v11, %v5159_v31  ;;  %v5164_v31 = vld [vmem:[#allocation44_spill] sm:$0xff]  ;;  %v5168_v18 = vld [vmem:[#allocation18_spill] sm:$0xff] }
 0x1e4   : > { %v3788_v54 = vmul.f32 %v3636_v11, %v5160_v22  ;;  %v3792_v7 = vmul.f32 %v3636_v11, %v5161_v4  ;;  %v3815_v53 = vmul.f32 %v3636_v11, %v5162_v26  ;;  %v3819_v52 = vmul.f32 %v3636_v11, %v5163_v45  ;;  %v5165_v4 = vld [vmem:[#allocation45_spill] sm:$0xff]  ;;  %v5166_v26 = vld [vmem:[#allocation8_spill] sm:$0xff] }
 0x1e5   : > { %v3825_v22 = vmul.f32 %v3636_v11, %v5164_v31  ;;  %v3829_v12 = vmul.f32 %v3636_v11, %v5165_v4  ;;  %v3834_v45 = vmul.f32 %v3636_v11, %v5166_v26  ;;  %v5169_v31 = vld [vmem:[#allocation19_spill] sm:$0xff]  ;;  %v3865_v60 = vmul.f32 %v3636_v11, %v5173_v62 }
 0x1e6   : > { %1623 = vmatpush.bf16.msra.mxu0 %v1052_v47  ;;  %2269 = vmatpush.bf16.msra.mxu1 %v1052_v47  ;;  %v3849_v4 = vmul.f32 %v3636_v11, %v5169_v31  ;;  %v3869_v31 = vmul.f32 %v3636_v11, %v5174_v17  ;;  %v3887_v17 = vmul.f32 %v3636_v11, %v5181_v5  ;;  %v5187_v5 = vld [vmem:[#allocation41_spill] sm:$0xff] }
 0x1e7   : > { %2270 = vmatpush.bf16.msra.mxu2 %v1052_v47  ;;  %2271 = vmatpush.bf16.msra.mxu3 %v1052_v47  ;;  %v3842_v47 = vmul.f32 %v3636_v11, %v5168_v18  ;;  %v3861_v18 = vmul.f32 %v3636_v11, %v5172_v50  ;;  %v5180_v50 = vld [vmem:[#allocation17_spill] sm:$0xff]  ;;  %v3905_v10 = vmul.f32 %v3636_v11, %v5187_v5 }
 0x1e8   : > { %5175 = vst [vmem:[#allocation22_spill] sm:$0xff] %v3869_v31  ;;  %v3883_v62 = vmul.f32 %v3636_v11, %v5180_v50  ;;  %v5185_v50 = vld [vmem:[#allocation40_spill] sm:$0xff]  ;;  %v3925_v25 = vmul.f32 %v3636_v11, %v5189_v55  ;;  %v3946_v55 = vld [vmem:[%s3893_s9 + $0x48] sm:$0xff]  ;;  %v5198_v31 = vld [vmem:[#allocation38_spill] sm:$0xff] }
 0x1e9   : > { %5182 = vst [vmem:[#allocation35_spill] sm:$0xff] %v3887_v17  ;;  %v3901_v21 = vmul.f32 %v3636_v11, %v5185_v50  ;;  %v5197_v17 = vld [vmem:[#allocation27_spill] sm:$0xff] }
 0x1ea   : > { %1624 = vmatpush.bf16.msra.mxu0 %v1051_v61  ;;  %2272 = vmatpush.bf16.msra.mxu1 %v1051_v61  ;;  %5192 = vst [vmem:[#allocation11_spill] sm:$0xff] %v3946_v55 }
 0x1eb   : > { %2273 = vmatpush.bf16.msra.mxu2 %v1051_v61  ;;  %2274 = vmatpush.bf16.msra.mxu3 %v1051_v61  ;;  %v3838_v61 = vmul.f32 %v3636_v11, %v5167_v9  ;;  %v3857_v9 = vmul.f32 %v3636_v11, %v5171_v56  ;;  %v3877_v56 = vmul.f32 %v3636_v11, %v5178_v63  ;;  %v3933_v63 = vld [vmem:[%s3893_s9 + $0x30] sm:$0xff] }
 0x1ec   : > { %5186 = vst [vmem:[#allocation47_spill] sm:$0xff] %v3901_v21  ;;  %v5199_v21 = vld [vmem:[#allocation39_spill] sm:$0xff] }
 0x1ed   : > { %5179 = vst [vmem:[#allocation34_spill] sm:$0xff] %v3877_v56  ;;  %v5194_v56 = vld [vmem:[#allocation26_spill] sm:$0xff] }
 0x1ee   : > { %1625 = vmatpush.bf16.msra.mxu0 %v1050_v14  ;;  %2275 = vmatpush.bf16.msra.mxu1 %v1050_v14  ;;  %5190 = vst [vmem:[#allocation10_spill] sm:$0xff] %v3933_v63  ;;  %v3957_v5 = vmul.f32 %v3636_v11, %v5194_v56  ;;  %v3975_v56 = vmul.f32 %v3636_v11, %v5199_v21 }
 0x1ef   : > { %2276 = vmatpush.bf16.msra.mxu2 %v1050_v14  ;;  %2277 = vmatpush.bf16.msra.mxu3 %v1050_v14  ;;  %v5170_v14 = vld [vmem:[#allocation30_spill] sm:$0xff] }
 0x1f0   : > { %v3853_v26 = vmul.f32 %v3636_v11, %v5170_v14  ;;  %v3873_v14 = vmul.f32 %v3636_v11, %v5176_v8  ;;  %v3891_v8 = vmul.f32 %v3636_v11, %v5183_v40  ;;  %v3921_v40 = vmul.f32 %v3636_v11, %v5188_v16  ;;  %v5191_v16 = vld [vmem:[#allocation14_spill] sm:$0xff] }
 0x1f1   : > { %v3941_v19 = vmul.f32 %v3636_v11, %v5191_v16  ;;  %v5195_v16 = vpack.c.bf16 %v3676_v46, %v3672_v38  ;;  %v5200_v38 = vpack.c.bf16 %v3692_v23, %v3688_v35  ;;  %v5201_v46 = vpack.c.bf16 %v3710_v43, %v3706_v41  ;;  %v5204_v35 = vld [vmem:[#allocation12_spill] sm:$0xff]  ;;  %v5205_v41 = vld [vmem:[#allocation13_spill] sm:$0xff] }
 0x1f2   : > { %5177 = vst [vmem:[#allocation23_spill] sm:$0xff] %v3873_v14  ;;  %1626 = vmatpush.bf16.msra.mxu0 %v3694_v29  ;;  %2278 = vmatpush.bf16.msra.mxu1 %v3694_v29  ;;  %v5193_v14 = vld [vmem:[#allocation15_spill] sm:$0xff]  ;;  %v3997_v23 = vmul.f32 %v3636_v11, %v5204_v35  ;;  %v4001_v43 = vmul.f32 %v3636_v11, %v5205_v41  ;;  %v5209_v35 = vld [vmem:[#allocation37_spill] sm:$0xff]  ;;  %v4021_v41 = vld [vmem:[%s3893_s9] sm:$0xf] }
 0x1f3   : > { %5184 = vst [vmem:[#allocation46_spill] sm:$0xff] %v3891_v8  ;;  %2279 = vmatpush.bf16.msra.mxu2 %v3694_v29  ;;  %2280 = vmatpush.bf16.msra.mxu3 %v3694_v29  ;;  %v3930_v29 = vld [vmem:[%s3893_s9 + $0x18] sm:$0xff]  ;;  %v3953_v50 = vmul.f32 %v3636_v11, %v5193_v14  ;;  %v3967_v8 = vmul.f32 %v3636_v11, %v5197_v17  ;;  %v5203_v17 = vld [vmem:[#allocation3_spill] sm:$0xff] }
 0x1f4   : > { %v3971_v14 = vmul.f32 %v3636_v11, %v5198_v31  ;;  %v3991_v21 = vmul.f32 %v3636_v11, %v5203_v17 }
 0x1f6   : > { %1627 = vmatpush.bf16.msra.mxu0 %v3696_v58  ;;  %2281 = vmatpush.bf16.msra.mxu1 %v3696_v58 }
 0x1f7   : > { %2282 = vmatpush.bf16.msra.mxu2 %v3696_v58  ;;  %2283 = vmatpush.bf16.msra.mxu3 %v3696_v58  ;;  %v5196_v58 = vpack.c.bf16 %v3684_v24, %v3680_v28  ;;  %v5202_v24 = vld [vmem:[#allocation2_spill] sm:$0xff]  ;;  %v4018_v28 = vmul.f32 %v3636_v11, %v5209_v35 }
 0x1f8   : > { %v3987_v31 = vmul.f32 %v3636_v11, %v5202_v24  ;;  %v5208_v24 = vld [vmem:[#allocation36_spill] sm:$0xff] }
 0x1f9   : > { %1638 = vmatmul.bf16.vlgmr.msra.gmra.mxu1 %v3930_v29  ;;  %1628 = vmatmul.bf16.vlgmr.msra.gmra.mxu0 %v2250_v27  ;;  %v4014_v17 = vmul.f32 %v3636_v11, %v5208_v24  ;;  %v5211_v27 = vpack.c.bf16 %v3726_v3, %v3722_v59  ;;  %v5214_v59 = vld [vmem:[#allocation62_spill] sm:$0xff] }
 0x1fa   : > { %1669 = vmatpush.bf16.msrb.mxu1 %v5195_v16  ;;  %1816 = vmatpush.bf16.msrb.mxu0 %v5201_v46  ;;  %v5206_v16 = vld [vmem:[#allocation24_spill] sm:$0xff]  ;;  %v4048_v3 = vmul.f32 %v3636_v11, %v5214_v59  ;;  %v4079_v59 = vmul.f32 %v3636_v11, %v3495_v39 }
 0x1fb   : > { %1718 = vmatpush.bf16.msrb.mxu2 %v5196_v58  ;;  %1767 = vmatpush.bf16.msrb.mxu3 %v5200_v38  ;;  %v4005_v58 = vmul.f32 %v3636_v11, %v5206_v16  ;;  %v5207_v38 = vld [vmem:[#allocation25_spill] sm:$0xff]  ;;  %v5210_v16 = vpack.c.bf16 %v3718_v34, %v3714_v15  ;;  %v5213_v15 = vpack.c.bf16 %v3742_v48, %v3738_v36  ;;  %v5217_v36 = vld [vmem:[#allocation79_spill] sm:$0xff]  ;;  %v1161_v34 = vshll.u32 %v4021_v41, 16 }
 0x1fc   : > { %1648 = vmatmul.bf16.vlgmr.msra.gmra.mxu2 %v3933_v63  ;;  %1658 = vmatmul.bf16.vlgmr.msra.gmra.mxu3 %v3946_v55  ;;  %v4010_v46 = vmul.f32 %v3636_v11, %v5207_v38  ;;  %v4036_v55 = vld [vmem:[%s3893_s9 + $0x4] sm:$0xf]  ;;  %v5212_v63 = vpack.c.bf16 %v3734_v20, %v3730_v13  ;;  %v4062_v48 = vmul.f32 %v3636_v11, %v5217_v36  ;;  %v4087_v38 = vld [vmem:[%s3893_s9 + $0xc] sm:$0xf] }
 0x1fd   : > { %v5216_v20 = vld [vmem:[#allocation78_spill] sm:$0xff]  ;;  %v1167_v13 = vshll.u32 %v4036_v55, 16  ;;  %v5219_v36 = vpack.c.bf16 %v3758_v44, %v3754_v0  ;;  %v1171_v24 = vshrl.u32 %v4036_v55, 16  ;;  %v1163_v0 = vrot.slane %v1161_v34, 5 }
 0x1fe   : > { %1670 = vmatpush.bf16.msrb.mxu1 %v5210_v16  ;;  %1817 = vmatpush.bf16.msrb.mxu0 %v5213_v15  ;;  %v5215_v16 = vld [vmem:[#allocation63_spill] sm:$0xff]  ;;  %v1158_v15 = vshrl.u32 %v4021_v41, 16  ;;  %v1182_v34 = vshrl.u32 %v4087_v38, 16 }
 0x1ff   : > { %1719 = vmatpush.bf16.msrb.mxu2 %v5211_v27  ;;  %1768 = vmatpush.bf16.msrb.mxu3 %v5212_v63  ;;  %v4052_v27 = vmul.f32 %v3636_v11, %v5215_v16  ;;  %v4058_v63 = vmul.f32 %v3636_v11, %v5216_v20  ;;  %v5218_v20 = vpack.c.bf16 %v3750_v2, %v3746_v42  ;;  %v4101_v44 = vrot.slane %v1167_v13, 5 }
 0x200   : > { %v4083_v16 = vmul.f32 %v3636_v11, %v3505_v37  ;;  %v1160_v35 = vrot.slane %v1158_v15, 4  ;;  %v5220_v42 = vpack.c.bf16 %v3766_v1, %v3762_v57  ;;  %v5221_v2 = vpack.c.bf16 %v3774_v32, %v3770_v6  ;;  %v4104_v15 = vld [vmem:[%s3893_s9 + $0x10] sm:$0xf]  ;;  %v1126_v6 = vld [vmem:[%s3893_s9 + $0x8] sm:$0x1]  ;;  %v5232_v57 = vld [vmem:[#allocation61_spill] sm:$0xff] }
 0x201   : > { %v4099_v37 = vmul.f32 %v3636_v11, %v3623_v30  ;;  %v4110_v1 = vmul.f32 %v3636_v11, %v3630_v51  ;;  %v1173_v32 = vrot.slane %v1171_v24, 4  ;;  %v1378_v30 = vrot.slane %v4036_v55, 5 }
 0x202   : > { %1671 = vmatpush.bf16.msrb.mxu1 %v5218_v20  ;;  %1818 = vmatpush.bf16.msrb.mxu0 %v5221_v2  ;;  %v1164_v20 = vor.u32 %v1163_v0, %v1160_v35  ;;  %v1185_v13 = vshll.u32 %v4087_v38, 16  ;;  %v5223_v51 = vpack.c.bf16 %v3792_v7, %v3788_v54  ;;  %v1191_v55 = vshll.u32 %v4104_v15, 16  ;;  %v4131_v54 = vld [vmem:[%s3893_s9 + $0x14] sm:$0x1]  ;;  %v4134_v2 = vld [vmem:[%s3893_s9 + $0x24] sm:$0xff]  ;;  %v4137_v0 = vld [vmem:[%s3893_s9 + $0x3c] sm:$0xff] }
 0x203   : > { %1720 = vmatpush.bf16.msrb.mxu2 %v5219_v36  ;;  %1769 = vmatpush.bf16.msrb.mxu3 %v5220_v42  ;;  %v5222_v36 = vpack.c.bf16 %v3782_v33, %v3778_v49  ;;  %v5224_v24 = vpack.c.bf16 %v3819_v52, %v3815_v53  ;;  %v5225_v35 = vpack.c.bf16 %v3829_v12, %v3825_v22  ;;  %v1177_v33 = vshll.u32 %v1126_v6, 16  ;;  %v4146_v22 = vld [vmem:[%s3893_s9 + $0x54] sm:$0xff] }
 0x204   : > { %v1174_v49 = vor.u32 %v1173_v32, %v4101_v44  ;;  %v1184_v7 = vrot.slane %v1182_v34, 4  ;;  %v1187_v42 = vrot.slane %v1185_v13, 5  ;;  %v2196_v53 = vrot.slane %v4021_v41, 9  ;;  %5226 = vst [vmem:[#allocation20_spill] sm:$0xff] %v4146_v22  ;;  %v4149_v32 = vld [vmem:[%s3893_s9 + $0xc] sm:$0xff] }
 0x205   : > { %v4142_v52 = vrot.slane %v1191_v55, 5  ;;  %v1195_v12 = vshrl.u32 %v4104_v15, 16  ;;  %v1380_v13 = vrot.slane %v1378_v30, 4  ;;  %v5229_v41 = vpack.c.bf16 %v3838_v61, %v3834_v45 }
 0x206   : > { %1672 = vmatpush.bf16.msrb.mxu1 %v5222_v36  ;;  %1819 = vmatpush.bf16.msrb.mxu0 %v5225_v35  ;;  %v1188_v35 = vor.u32 %v1187_v42, %v1184_v7  ;;  %v5230_v55 = vpack.c.bf16 %v3849_v4, %v3842_v47  ;;  %v5231_v36 = vld [vmem:[#allocation60_spill] sm:$0xff]  ;;  %v4169_v39 = vmul.f32 %v3636_v11, %v5232_v57  ;;  %v1201_v45 = vshll.u32 %v4131_v54, 16 }
 0x207   : > { %1721 = vmatpush.bf16.msrb.mxu2 %v5223_v51  ;;  %1770 = vmatpush.bf16.msrb.mxu3 %v5224_v24  ;;  %v1165_v51 = vrot.slane %v1164_v20, 4  ;;  %v1381_v24 = vrot.slane %v1126_v6, 5  ;;  %v4165_v20 = vmul.f32 %v3636_v11, %v5231_v36  ;;  %v1197_v61 = vrot.slane %v1195_v12, 4  ;;  %v5237_v7 = vld [vmem:[#allocation76_spill] sm:$0xff]  ;;  %v5238_v12 = vld [vmem:[#allocation77_spill] sm:$0xff] }
 0x208   : > { %v5235_v47 = vpack.c.bf16 %v3857_v9, %v3853_v26  ;;  %v5236_v4 = vpack.c.bf16 %v3865_v60, %v3861_v18  ;;  %v4188_v42 = vmul.f32 %v3636_v11, %v5237_v7  ;;  %v1175_v36 = vrot.slane %v1174_v49, 4  ;;  %v5239_v18 = vld [vmem:[#allocation92_spill] sm:$0xff] }
 0x209   : > { %1643 = vmatmul.bf16.gmra.mxu1 %v4134_v2  ;;  %v4194_v26 = vmul.f32 %v3636_v11, %v5238_v12  ;;  %v1379_v60 = vsel %vm4153_vm7, %v2196_v53, %v1378_v30  ;;  %v1198_v9 = vor.u32 %v1197_v61, %v4142_v52  ;;  %1633 = vmatmul.bf16.gmra.mxu0 %v4149_v32  ;;  %v5241_v30 = vld [vmem:[#allocation22_spill] sm:$0xff] }
 0x20a   : > { %1673 = vmatpush.bf16.msrb.mxu1 %v5229_v41  ;;  %1820 = vmatpush.bf16.msrb.mxu0 %v5236_v4  ;;  %v1179_v41 = vrot.slane %v1177_v33, 5  ;;  %v4203_v49 = vmul.f32 %v3636_v11, %v5239_v18  ;;  %v1170_v33 = vsel %vm4173_vm8, %v1165_v51, %v4101_v44  ;;  %v5240_v4 = vld [vmem:[#allocation23_spill] sm:$0xff]  ;;  %v5243_v61 = vld [vmem:[#allocation34_spill] sm:$0xff]  ;;  %v1094_v12 = vpack.c.bf16 %v4169_v39, %v4165_v20  ;;  %v5245_v18 = vld [vmem:[#allocation93_spill] sm:$0xff] }
 0x20b   : > { %1722 = vmatpush.bf16.msrb.mxu2 %v5230_v55  ;;  %1771 = vmatpush.bf16.msrb.mxu3 %v5235_v47  ;;  %v1382_v55 = vsel %vm4153_vm7, %v1380_v13, %v1381_v24  ;;  %v1189_v47 = vrot.slane %v1188_v35, 4  ;;  %v5242_v53 = vpack.c.bf16 %v5240_v4, %v5241_v30  ;;  %v5244_v7 = vpack.c.bf16 %v3883_v62, %v5243_v61  ;;  %v5247_v13 = vld [vmem:[#allocation35_spill] sm:$0xff]  ;;  %v5251_v30 = vld [vmem:[#allocation106_spill] sm:$0xff] }
 0x20c   : > { %1653 = vmatmul.bf16.gmra.mxu2 %v4137_v0  ;;  %1663 = vmatmul.bf16.gmra.mxu3 %v4146_v22  ;;  %v4220_v57 = vmul.f32 %v3636_v11, %v5245_v18  ;;  %v1199_v44 = vrot.slane %v1198_v9, 4  ;;  %v1203_v51 = vrot.slane %v1201_v45, 5  ;;  %v5246_v22 = vld [vmem:[#allocation46_spill] sm:$0xff]  ;;  %v5249_v35 = vld [vmem:[#allocation47_spill] sm:$0xff]  ;;  %v4230_v62 = vmul.f32 %v3636_v11, %v5251_v30 }
 0x20d   : > { %v5248_v24 = vpack.c.bf16 %v5246_v22, %v5247_v13  ;;  %v5250_v4 = vpack.c.bf16 %v3905_v10, %v5249_v35  ;;  %v1180_v9 = vsel %vm4173_vm8, %v1175_v36, %v1179_v41  ;;  %v1564_v45 = vunpack.c.l.b16 %v1379_v60  ;;  %v5253_v18 = vld [vmem:[#allocation58_spill] sm:$0xff]  ;;  %v5254_v10 = vld [vmem:[#allocation59_spill] sm:$0xff] }
 0x20e   : > { %1674 = vmatpush.bf16.msrb.mxu1 %v5242_v53  ;;  %v5252_v53 = vld [vmem:[#allocation107_spill] sm:$0xff]  ;;  %v1565_v22 = vunpack.c.l.b16 %v1382_v55  ;;  %v4242_v13 = vmul.f32 %v3636_v11, %v5253_v18  ;;  %v1194_v35 = vsel %vm4173_vm8, %v1189_v47, %v4142_v52  ;;  %v5257_v60 = vld [vmem:[#allocation90_spill] sm:$0xff]  ;;  %v5258_v55 = vpack.c.bf16 %v3925_v25, %v3921_v40  ;;  %v5264_v40 = vld [vmem:[#allocation105_spill] sm:$0xff] }
 0x20f   : > { %1723 = vmatpush.bf16.msrb.mxu2 %v5244_v7  ;;  %1772 = vmatpush.bf16.msrb.mxu3 %v5248_v24  ;;  %v4234_v61 = vmul.f32 %v3636_v11, %v5252_v53  ;;  %v4238_v7 = vunpack.c.l.b16 %v1170_v33  ;;  %v4246_v24 = vmul.f32 %v3636_v11, %v5254_v10  ;;  %v5256_v36 = vld [vmem:[#allocation75_spill] sm:$0xff]  ;;  %v4261_v33 = vmul.f32 %v3636_v11, %v5257_v60 }
 0x210   : > { %1821 = vmatpush.bf16.msrb.mxu0 %v5250_v4  ;;  %v5255_v4 = vld [vmem:[#allocation74_spill] sm:$0xff]  ;;  %v4257_v41 = vmul.f32 %v3636_v11, %v5256_v36  ;;  %v5259_v52 = vpack.c.bf16 %v3953_v50, %v3941_v19  ;;  %v4269_v47 = vunpack.c.l.b16 %v1180_v9  ;;  %v1204_v53 = vsel %vm4173_vm8, %v1199_v44, %v1203_v51  ;;  %v5260_v18 = vld [vmem:[#allocation91_spill] sm:$0xff]  ;;  %v5265_v44 = vld [vmem:[#allocation56_spill] sm:$0xff] }
 0x211   : > { %v4253_v30 = vmul.f32 %v3636_v11, %v5255_v4  ;;  %v4275_v10 = vmul.f32 %v3636_v11, %v5260_v18  ;;  %v5261_v4 = vld [vmem:[#allocation104_spill] sm:$0xff]  ;;  %v5262_v25 = vpack.c.bf16 %v3967_v8, %v3957_v5  ;;  %v5263_v19 = vpack.c.bf16 %v3975_v56, %v3971_v14  ;;  %v5266_v9 = vld [vmem:[#allocation57_spill] sm:$0xff] }
 0x212   : > { %1675 = vmatpush.bf16.msrb.mxu1 %v5258_v55  ;;  %v4279_v36 = vmul.f32 %v3636_v11, %v5261_v4  ;;  %v4289_v50 = vmul.f32 %v3636_v11, %v5264_v40  ;;  %v4293_v51 = vmul.f32 %v3636_v11, %v5265_v44  ;;  %v4297_v60 = vmul.f32 %v3636_v11, %v5266_v9  ;;  %v4306_v55 = vld [vmem:[%s3893_s9 + $0x18] sm:$0xf]  ;;  %v5267_v4 = vld [vmem:[#allocation72_spill] sm:$0xff]  ;;  %v5285_v9 = vld [vmem:[#allocation86_spill] sm:$0xff] }
 0x213   : > { %1724 = vmatpush.bf16.msrb.mxu2 %v5259_v52  ;;  %1773 = vmatpush.bf16.msrb.mxu3 %v5262_v25  ;;  %v1102_v8 = vpack.c.bf16 %v4194_v26, %v4188_v42  ;;  %v1110_v5 = vpack.c.bf16 %v4220_v57, %v4203_v49  ;;  %v1118_v14 = vpack.c.bf16 %v4234_v61, %v4230_v62  ;;  %v1534_v52 = vunpack.c.l.b16 %v1194_v35  ;;  %v5279_v35 = vld [vmem:[#allocation102_spill] sm:$0xff] }
 0x214   : > { %1822 = vmatpush.bf16.msrb.mxu0 %v5263_v19  ;;  %v1580_v56 = vpack.c.b16 %v1565_v22, %v1564_v45  ;;  %v1535_v18 = vunpack.c.l.b16 %v1204_v53  ;;  %v4310_v25 = vmul.f32 %v3636_v11, %v5267_v4  ;;  %v5268_v19 = vld [vmem:[#allocation73_spill] sm:$0xff]  ;;  %v5269_v42 = vpack.c.bf16 %v3991_v21, %v3987_v31  ;;  %v4385_v53 = vld [vmem:[%s3893_s9 + $0x20] sm:$0x1] }
 0x215   : > { %v4314_v40 = vmul.f32 %v3636_v11, %v5268_v19  ;;  %v5270_v57 = vpack.c.bf16 %v4001_v43, %v3997_v23  ;;  %v1548_v26 = vpack.c.b16 %v4269_v47, %v4238_v7  ;;  %v1093_v49 = vpack.c.bf16 %v4246_v24, %v4242_v13  ;;  %v5281_v47 = vld [vmem:[#allocation54_spill] sm:$0xff]  ;;  %v5287_v19 = vld [vmem:[#allocation100_spill] sm:$0xff] }
 0x216   : > { %1676 = vmatpush.bf16.msrb.mxu1 %v5269_v42  ;;  %v1101_v62 = vpack.c.bf16 %v4257_v41, %v4253_v30  ;;  %v2197_v61 = vrot.slane %v4087_v38, 9  ;;  %v5271_v45 = vpack.c.bf16 %v4010_v46, %v4005_v58  ;;  %v5272_v31 = vpack.c.bf16 %v4018_v28, %v4014_v17  ;;  %v5275_v58 = vld [vmem:[#allocation88_spill] sm:$0xff]  ;;  %v5276_v17 = vld [vmem:[#allocation89_spill] sm:$0xff]  ;;  %v5280_v41 = vld [vmem:[#allocation103_spill] sm:$0xff] }
 0x217   : > { %1725 = vmatpush.bf16.msrb.mxu2 %v5270_v57  ;;  %v1109_v21 = vpack.c.bf16 %v4275_v10, %v4261_v33  ;;  %v1117_v23 = vpack.c.bf16 %v4289_v50, %v4279_v36  ;;  %v1092_v43 = vpack.c.bf16 %v4297_v60, %v4293_v51  ;;  %v1206_v7 = vshrl.u32 %v4306_v55, 16  ;;  %v5283_v36 = vld [vmem:[#allocation70_spill] sm:$0xff] }
 0x218   : > { %1774 = vmatpush.bf16.msrb.mxu3 %v5271_v45  ;;  %1823 = vmatpush.bf16.msrb.mxu0 %v5272_v31  ;;  %v5273_v38 = vpack.c.bf16 %v4052_v27, %v4048_v3  ;;  %v5274_v28 = vpack.c.bf16 %v4062_v48, %v4058_v63  ;;  %v4350_v46 = vmul.f32 %v3636_v11, %v5275_v58  ;;  %v1385_v13 = vrot.slane %v4104_v15, 5  ;;  %v5288_v45 = vld [vmem:[#allocation101_spill] sm:$0xff]  ;;  %v5299_v60 = vld [vmem:[#allocation66_spill] sm:$0xff] }
 0x219   : > { %v4354_v22 = vmul.f32 %v3636_v11, %v5276_v17  ;;  %v1209_v24 = vshll.u32 %v4306_v55, 16  ;;  %v5277_v3 = vpack.c.bf16 %v4083_v16, %v4079_v59  ;;  %v5278_v27 = vpack.c.bf16 %v4110_v1, %v4099_v37  ;;  %v5282_v16 = vld [vmem:[#allocation55_spill] sm:$0xff]  ;;  %v4382_v1 = vld [vmem:[%s3893_s9 + $0x1c] sm:$0xf]  ;;  %1677 = vmatmul.bf16.vlgmr.msrb.gmra.mxu1 %v1548_v26 }
 0x21a   : > { %1865 = vmatpush.bf16.msra.mxu1 %v5273_v38  ;;  %v4364_v63 = vpack.c.b16 %v1535_v18, %v1534_v52  ;;  %v1100_v48 = vpack.c.bf16 %v4314_v40, %v4310_v25  ;;  %v1040_v30 = vmul.f32 %v3636_v11, %v5279_v35  ;;  %v1388_v15 = vrot.slane %v4131_v54, 5  ;;  %v5284_v54 = vld [vmem:[#allocation71_spill] sm:$0xff] }
 0x21b   : > { %1914 = vmatpush.bf16.msra.mxu2 %v5274_v28  ;;  %v1041_v33 = vmul.f32 %v3636_v11, %v5280_v41  ;;  %v4375_v59 = vmul.f32 %v3636_v11, %v5281_v47  ;;  %v4379_v37 = vmul.f32 %v3636_v11, %v5282_v16  ;;  %v1208_v10 = vrot.slane %v1206_v7, 4  ;;  %v5286_v18 = vld [vmem:[#allocation87_spill] sm:$0xff] }
 0x21c   : > { %1963 = vmatpush.bf16.msra.mxu3 %v5277_v3  ;;  %2012 = vmatpush.bf16.msra.mxu0 %v5278_v27  ;;  %v4389_v50 = vmul.f32 %v3636_v11, %v5283_v36  ;;  %v4393_v44 = vmul.f32 %v3636_v11, %v5284_v54  ;;  %v4397_v52 = vmul.f32 %v3636_v11, %v5285_v9  ;;  %v1387_v42 = vrot.slane %v1385_v13, 4  ;;  %v5291_v27 = vld [vmem:[#allocation68_spill] sm:$0xff] }
 0x21d   : > { %v4401_v4 = vmul.f32 %v3636_v11, %v5286_v18  ;;  %v1108_v25 = vpack.c.bf16 %v4354_v22, %v4350_v46  ;;  %v4410_v40 = vmul.f32 %v3636_v11, %v5287_v19  ;;  %v1211_v57 = vrot.slane %v1209_v24, 5  ;;  %1726 = vmatmul.bf16.vlgmr.msrb.gmra.mxu2 %v1580_v56  ;;  %1775 = vmatmul.bf16.vlgmr.msrb.gmra.mxu3 %v4149_v32  ;;  %v5289_v56 = vld [vmem:[#allocation52_spill] sm:$0xff]  ;;  %v5290_v46 = vld [vmem:[#allocation53_spill] sm:$0xff]  ;;  %v5301_v19 = vld [vmem:[#allocation82_spill] sm:$0xff] }
 0x21e   : > { %1866 = vmatpush.bf16.msra.mxu1 %v1094_v12  ;;  %v4414_v31 = vmul.f32 %v3636_v11, %v5288_v45  ;;  %v1215_v7 = vshll.u32 %v4382_v1, 16  ;;  %v1219_v39 = vshrl.u32 %v4382_v1, 16  ;;  %v1225_v20 = vshll.u32 %v4385_v53, 16  ;;  %1824 = vmatmul.bf16.vlgmr.msrb.gmra.mxu0 %v4364_v63  ;;  %v4474_v45 = vld [vmem:[%s3893_s9 + $0x28] sm:$0xf] }
 0x21f   : > { %1915 = vmatpush.bf16.msra.mxu2 %v1102_v8  ;;  %v1116_v12 = vpack.c.bf16 %v1041_v33, %v1040_v30  ;;  %v1091_v8 = vpack.c.bf16 %v4379_v37, %v4375_v59  ;;  %v1212_v38 = vor.u32 %v1211_v57, %v1208_v10  ;;  %v988_v26 = vmul.f32 %v3636_v11, %v5289_v56  ;;  %v5292_v30 = vld [vmem:[#allocation69_spill] sm:$0xff]  ;;  %v5293_v33 = vld [vmem:[#allocation84_spill] sm:$0xff]  ;;  %v5296_v59 = vld [vmem:[#allocation99_spill] sm:$0xff] }
 0x220   : > { %1964 = vmatpush.bf16.msra.mxu3 %v1110_v5  ;;  %2013 = vmatpush.bf16.msra.mxu0 %v1118_v14  ;;  %v1099_v5 = vpack.c.bf16 %v4393_v44, %v4389_v50  ;;  %v1107_v14 = vpack.c.bf16 %v4401_v4, %v4397_v52  ;;  %v1217_v28 = vrot.slane %v1215_v7, 5  ;;  %v1221_v58 = vrot.slane %v1219_v39, 4  ;;  %v5297_v50 = vld [vmem:[#allocation50_spill] sm:$0xff]  ;;  %v5298_v44 = vld [vmem:[#allocation51_spill] sm:$0xff] }
 0x221   : > { %v989_v17 = vmul.f32 %v3636_v11, %v5290_v46  ;;  %v1386_v32 = vsel %vm4153_vm7, %v2197_v61, %v1385_v13  ;;  %v1213_v22 = vrot.slane %v1212_v38, 4  ;;  %v1115_v24 = vpack.c.bf16 %v4414_v31, %v4410_v40  ;;  %v5294_v13 = vld [vmem:[#allocation85_spill] sm:$0xff] }
 0x222   : > { %1867 = vmatpush.bf16.msra.mxu1 %v1093_v49  ;;  %v1389_v3 = vsel %vm4153_vm7, %v1387_v42, %v1388_v15  ;;  %v1222_v49 = vor.u32 %v1221_v58, %v1217_v28  ;;  %v1004_v35 = vmul.f32 %v3636_v11, %v5291_v27  ;;  %v1005_v41 = vmul.f32 %v3636_v11, %v5292_v30  ;;  %v5302_v42 = vld [vmem:[#allocation83_spill] sm:$0xff]  ;;  %v5305_v27 = vld [vmem:[#allocation48_spill] sm:$0xff]  ;;  %v5306_v30 = vld [vmem:[#allocation49_spill] sm:$0xff] }
 0x223   : > { %1916 = vmatpush.bf16.msra.mxu2 %v1101_v62  ;;  %v1227_v62 = vrot.slane %v1225_v20, 5  ;;  %v1020_v61 = vmul.f32 %v3636_v11, %v5293_v33  ;;  %v1037_v15 = vmul.f32 %v3636_v11, %v5296_v59  ;;  %v1566_v16 = vunpack.c.l.b16 %v1386_v32  ;;  %v5303_v32 = vld [vmem:[#allocation96_spill] sm:$0xff] }
 0x224   : > { %1965 = vmatpush.bf16.msra.mxu3 %v1109_v21  ;;  %2014 = vmatpush.bf16.msra.mxu0 %v1117_v23  ;;  %v1021_v21 = vmul.f32 %v3636_v11, %v5294_v13  ;;  %v5295_v23 = vld [vmem:[#allocation98_spill] sm:$0xff]  ;;  %v1223_v37 = vrot.slane %v1222_v49, 4  ;;  %v1567_v10 = vunpack.c.l.b16 %v1389_v3  ;;  %v1218_v36 = vsel %vm4173_vm8, %v1213_v22, %v1217_v28  ;;  %v5304_v3 = vld [vmem:[#allocation97_spill] sm:$0xff]  ;;  %v5307_v13 = vld [vmem:[#allocation64_spill] sm:$0xff] }
 0x225   : > { %v1036_v47 = vmul.f32 %v3636_v11, %v5295_v23  ;;  %v4456_v54 = vmul.f32 %v3636_v11, %v5297_v50  ;;  %v987_v9 = vmul.f32 %v3636_v11, %v5298_v44  ;;  %v1090_v18 = vpack.c.bf16 %v989_v17, %v988_v26  ;;  %v4482_v26 = vld [vmem:[%s3893_s9 + $0x2c] sm:$0x1]  ;;  %v5308_v23 = vld [vmem:[#allocation65_spill] sm:$0xff] }
 0x226   : > { %1868 = vmatpush.bf16.msra.mxu1 %v1092_v43  ;;  %v1228_v51 = vsel %vm4173_vm8, %v1223_v37, %v1227_v62  ;;  %v1002_v43 = vmul.f32 %v3636_v11, %v5299_v60  ;;  %v1098_v4 = vpack.c.bf16 %v1005_v41, %v1004_v35  ;;  %v1018_v40 = vmul.f32 %v3636_v11, %v5301_v19 }
 0x227   : > { %1917 = vmatpush.bf16.msra.mxu2 %v1100_v48  ;;  %v5300_v48 = vld [vmem:[#allocation67_spill] sm:$0xff]  ;;  %v1019_v57 = vmul.f32 %v3636_v11, %v5302_v42  ;;  %v1106_v31 = vpack.c.bf16 %v1021_v21, %v1020_v61  ;;  %v1114_v7 = vpack.c.bf16 %v1037_v15, %v1036_v47  ;;  %v1536_v39 = vunpack.c.l.b16 %v1218_v36 }
 0x228   : > { %1966 = vmatpush.bf16.msra.mxu3 %v1108_v25  ;;  %2015 = vmatpush.bf16.msra.mxu0 %v1116_v12  ;;  %v1003_v52 = vmul.f32 %v3636_v11, %v5300_v48  ;;  %v4471_v25 = vld [vmem:[%s3893_s9 + $0x24] sm:$0xf]  ;;  %v1537_v20 = vunpack.c.l.b16 %v1228_v51  ;;  %v4476_v12 = vpack.c.b16 %v1567_v10, %v1566_v16  ;;  %v1089_v38 = vpack.c.bf16 %v987_v9, %v4456_v54  ;;  %v5309_v16 = vld [vmem:[#allocation80_spill] sm:$0xff]  ;;  %v5310_v10 = vld [vmem:[#allocation81_spill] sm:$0xff] }
 0x229   : > { %v2198_v28 = vrot.slane %v4306_v55, 9  ;;  %v1392_v58 = vrot.slane %v4382_v1, 5  ;;  %v1230_v46 = vshrl.u32 %v4471_v25, 16  ;;  %v1233_v17 = vshll.u32 %v4471_v25, 16  ;;  %1682 = vmatmul.bf16.gmra.mxu1 %v4364_v63  ;;  %v5311_v9 = vld [vmem:[#allocation94_spill] sm:$0xff]  ;;  %v5312_v51 = vld [vmem:[#allocation95_spill] sm:$0xff] }
 0x22a   : > { %1869 = vmatpush.bf16.msra.mxu1 %v1091_v8  ;;  %v1097_v56 = vpack.c.bf16 %v1003_v52, %v1002_v43  ;;  %v1239_v8 = vshll.u32 %v4474_v45, 16  ;;  %v1034_v22 = vmul.f32 %v3636_v11, %v5303_v32  ;;  %v1035_v55 = vmul.f32 %v3636_v11, %v5304_v3  ;;  %v4517_v48 = vld [vmem:[%s3893_s9 + $0x30] sm:$0xf] }
 0x22b   : > { %1918 = vmatpush.bf16.msra.mxu2 %v1099_v5  ;;  %v1105_v5 = vpack.c.bf16 %v1019_v57, %v1018_v40  ;;  %v1243_v1 = vshrl.u32 %v4474_v45, 16  ;;  %v1235_v49 = vrot.slane %v1233_v17, 5  ;;  %v984_v35 = vmul.f32 %v3636_v11, %v5305_v27 }
 0x22c   : > { %1967 = vmatpush.bf16.msra.mxu3 %v1107_v14  ;;  %2016 = vmatpush.bf16.msra.mxu0 %v1115_v24  ;;  %v4492_v14 = vpack.c.b16 %v1537_v20, %v1536_v39  ;;  %v1232_v24 = vrot.slane %v1230_v46, 4  ;;  %v1241_v62 = vrot.slane %v1239_v8, 5  ;;  %v985_v41 = vmul.f32 %v3636_v11, %v5306_v30 }
 0x22d   : > { %v1245_v33 = vrot.slane %v1243_v1, 4  ;;  %v1249_v61 = vshll.u32 %v4482_v26, 16  ;;  %v1000_v21 = vmul.f32 %v3636_v11, %v5307_v13  ;;  %v1001_v47 = vmul.f32 %v3636_v11, %v5308_v23  ;;  %1731 = vmatmul.bf16.gmra.mxu2 %v4476_v12  ;;  %1780 = vmatmul.bf16.gmra.mxu3 %v3930_v29  ;;  %v4550_v13 = vld [vmem:[%s3893_s9 + $0x40] sm:$0xf] }
 0x22e   : > { %1870 = vmatpush.bf16.msra.mxu1 %v1090_v18  ;;  %v1394_v59 = vrot.slane %v1392_v58, 4  ;;  %v1236_v15 = vor.u32 %v1235_v49, %v1232_v24  ;;  %v1016_v37 = vmul.f32 %v3636_v11, %v5309_v16  ;;  %v1017_v36 = vmul.f32 %v3636_v11, %v5310_v10  ;;  %1829 = vmatmul.bf16.gmra.mxu0 %v4492_v14 }
 0x22f   : > { %1919 = vmatpush.bf16.msra.mxu2 %v1098_v4  ;;  %v1395_v50 = vrot.slane %v4385_v53, 5  ;;  %v1246_v54 = vor.u32 %v1245_v33, %v1241_v62  ;;  %v1113_v44 = vpack.c.bf16 %v1035_v55, %v1034_v22  ;;  %v1032_v63 = vmul.f32 %v3636_v11, %v5311_v9  ;;  %v4520_v53 = vld [vmem:[%s3893_s9 + $0x34] sm:$0xf]  ;;  %v1138_v22 = vld [vmem:[%s3893_s9 + $0x38] sm:$0x1] }
 0x230   : > { %1968 = vmatpush.bf16.msra.mxu3 %v1106_v31  ;;  %2017 = vmatpush.bf16.msra.mxu0 %v1114_v7  ;;  %v1033_v60 = vmul.f32 %v3636_v11, %v5312_v51  ;;  %v1237_v43 = vrot.slane %v1236_v15, 4  ;;  %v1251_v18 = vrot.slane %v1249_v61, 5  ;;  %v1088_v29 = vpack.c.bf16 %v985_v41, %v984_v35  ;;  %v4547_v61 = vld [vmem:[%s3893_s9 + $0x3c] sm:$0xf] }
 0x231   : > { %v1247_v52 = vrot.slane %v1246_v54, 4  ;;  %v1096_v4 = vpack.c.bf16 %v1001_v47, %v1000_v21  ;;  %v1104_v19 = vpack.c.bf16 %v1017_v36, %v1016_v37  ;;  %v1393_v40 = vsel %vm4153_vm7, %v2198_v28, %v1392_v58 }
 0x232   : > { %1871 = vmatpush.bf16.msra.mxu1 %v1089_v38  ;;  %v1396_v11 = vsel %vm4153_vm7, %v1394_v59, %v1395_v50  ;;  %v1254_v42 = vshrl.u32 %v4517_v48, 16  ;;  %v1112_v57 = vpack.c.bf16 %v1033_v60, %v1032_v63  ;;  %v1242_v31 = vsel %vm4173_vm8, %v1237_v43, %v1241_v62  ;;  %v1141_v60 = vld [vmem:[%s3893_s9 + $0x44] sm:$0x1] }
 0x233   : > { %1920 = vmatpush.bf16.msra.mxu2 %v1097_v56  ;;  %v1257_v7 = vshll.u32 %v4517_v48, 16  ;;  %v1263_v39 = vshll.u32 %v4520_v53, 16  ;;  %v1252_v20 = vsel %vm4173_vm8, %v1247_v52, %v1251_v18  ;;  %v1267_v38 = vshrl.u32 %v4520_v53, 16 }
 0x234   : > { %1969 = vmatpush.bf16.msra.mxu3 %v1105_v5  ;;  %2018 = vmatpush.bf16.msra.mxu0 %v1113_v44  ;;  %v1568_v28 = vunpack.c.l.b16 %v1393_v40  ;;  %v1569_v58 = vunpack.c.l.b16 %v1396_v11  ;;  %v1538_v56 = vunpack.c.l.b16 %v1242_v31  ;;  %v1256_v46 = vrot.slane %v1254_v42, 4  ;;  %v5313_v42 = vld [vmem:[#allocation10_spill] sm:$0xff] }
 0x235   : > { %v1539_v17 = vunpack.c.l.b16 %v1252_v20  ;;  %v1259_v8 = vrot.slane %v1257_v7, 5  ;;  %v1265_v5 = vrot.slane %v1263_v39, 5  ;;  %v1269_v32 = vrot.slane %v1267_v38, 4 }
 0x236   : > { %1872 = vmatpush.bf16.msra.mxu1 %v1088_v29  ;;  %v4535_v3 = vpack.c.b16 %v1569_v58, %v1568_v28  ;;  %v1399_v55 = vrot.slane %v4474_v45, 5  ;;  %v1273_v62 = vshll.u32 %v1138_v22, 16  ;;  %v2199_v27 = vrot.slane %v4471_v25, 9 }
 0x237   : > { %1921 = vmatpush.bf16.msra.mxu2 %v1096_v4  ;;  %v4538_v1 = vpack.c.b16 %v1539_v17, %v1538_v56  ;;  %v1260_v24 = vor.u32 %v1259_v8, %v1256_v46  ;;  %v1270_v49 = vor.u32 %v1269_v32, %v1265_v5  ;;  %v1402_v35 = vrot.slane %v4482_v26, 5 }
 0x238   : > { %1970 = vmatpush.bf16.msra.mxu3 %v1104_v19  ;;  %2019 = vmatpush.bf16.msra.mxu0 %v1112_v57  ;;  %v1401_v30 = vrot.slane %v1399_v55, 4  ;;  %v1275_v33 = vrot.slane %v1273_v62, 5  ;;  %v1400_v21 = vsel %vm4153_vm7, %v2199_v27, %v1399_v55  ;;  %v1278_v47 = vshrl.u32 %v4547_v61, 16  ;;  %v4579_v57 = vld [vmem:[%s3893_s9 + $0x4c] sm:$0xf] }
 0x239   : > { %1687 = vmatmul.bf16.gmra.mxu1 %v4492_v14  ;;  %v1261_v45 = vrot.slane %v1260_v24, 4  ;;  %v1271_v41 = vrot.slane %v1270_v49, 4  ;;  %v1281_v59 = vshll.u32 %v4547_v61, 16  ;;  %v1287_v15 = vshll.u32 %v4550_v13, 16  ;;  %v1144_v27 = vld [vmem:[%s3893_s9 + $0x50] sm:$0x1] }
 0x23a   : > { %v1403_v25 = vsel %vm4153_vm7, %v1401_v30, %v1402_v35  ;;  %v1291_v16 = vshrl.u32 %v4550_v13, 16  ;;  %v1570_v37 = vunpack.c.l.b16 %v1400_v21  ;;  %v1280_v54 = vrot.slane %v1278_v47, 4 }
 0x23b   : > { %v1266_v26 = vsel %vm4173_vm8, %v1261_v45, %v1265_v5  ;;  %v1276_v23 = vsel %vm4173_vm8, %v1271_v41, %v1275_v33  ;;  %v1571_v10 = vunpack.c.l.b16 %v1403_v25  ;;  %v1283_v44 = vrot.slane %v1281_v59, 5 }
 0x23c   : > { %v1540_v36 = vunpack.c.l.b16 %v1266_v26  ;;  %v1541_v50 = vunpack.c.l.b16 %v1276_v23  ;;  %v1289_v9 = vrot.slane %v1287_v15, 5  ;;  %v1293_v63 = vrot.slane %v1291_v16, 4  ;;  %v4608_v16 = vld [vmem:[%s3893_s9 + $0x58] sm:$0xf] }
 0x23d   : > { %1736 = vmatmul.bf16.gmra.mxu2 %v4535_v3  ;;  %1785 = vmatmul.bf16.gmra.mxu3 %v4134_v2  ;;  %v1406_v51 = vrot.slane %v4520_v53, 5  ;;  %v4566_v43 = vpack.c.b16 %v1571_v10, %v1570_v37  ;;  %v1284_v18 = vor.u32 %v1283_v44, %v1280_v54  ;;  %v1297_v4 = vshll.u32 %v1141_v60, 16  ;;  %v4576_v53 = vld [vmem:[%s3893_s9 + $0x48] sm:$0xf] }
 0x23e   : > { %1834 = vmatmul.bf16.gmra.mxu0 %v4538_v1  ;;  %v4568_v52 = vpack.c.b16 %v1541_v50, %v1540_v36  ;;  %v1294_v29 = vor.u32 %v1293_v63, %v1289_v9  ;;  %v2200_v19 = vrot.slane %v4517_v48, 9  ;;  %v1409_v11 = vrot.slane %v1138_v22, 5 }
 0x23f   : > { %v1408_v40 = vrot.slane %v1406_v51, 4  ;;  %v1285_v31 = vrot.slane %v1284_v18, 4  ;;  %v1299_v39 = vrot.slane %v1297_v4, 5  ;;  %v1302_v38 = vshrl.u32 %v4576_v53, 16 }
 0x240   : > { %v1295_v7 = vrot.slane %v1294_v29, 4  ;;  %v1407_v48 = vsel %vm4153_vm7, %v2200_v19, %v1406_v51  ;;  %v1305_v28 = vshll.u32 %v4576_v53, 16  ;;  %v1311_v58 = vshll.u32 %v4579_v57, 16 }
 0x241   : > { %v1410_v20 = vsel %vm4153_vm7, %v1408_v40, %v1409_v11  ;;  %v1315_v56 = vshrl.u32 %v4579_v57, 16  ;;  %v1290_v46 = vsel %vm4173_vm8, %v1285_v31, %v1289_v9  ;;  %v1572_v8 = vunpack.c.l.b16 %v1407_v48  ;;  %v1147_v11 = vld [vmem:[%s3893_s9 + $0x5c] sm:$0x1] }
 0x242   : > { %v1300_v17 = vsel %vm4173_vm8, %v1295_v7, %v1299_v39  ;;  %v1573_v5 = vunpack.c.l.b16 %v1410_v20  ;;  %v1304_v32 = vrot.slane %v1302_v38, 4  ;;  %v1307_v22 = vrot.slane %v1305_v28, 5 }
 0x243   : > { %v1313_v55 = vrot.slane %v1311_v58, 5  ;;  %v1317_v24 = vrot.slane %v1315_v56, 4  ;;  %v1542_v49 = vunpack.c.l.b16 %v1290_v46  ;;  %v1543_v62 = vunpack.c.l.b16 %v1300_v17  ;;  %v5314_v58 = vld [vmem:[#allocation11_spill] sm:$0xff] }
 0x244   : > { %v4594_v35 = vpack.c.b16 %v1573_v5, %v1572_v8  ;;  %v1413_v30 = vrot.slane %v4550_v13, 5  ;;  %v1308_v45 = vor.u32 %v1307_v22, %v1304_v32  ;;  %v1321_v33 = vshll.u32 %v1144_v27, 16  ;;  %v4605_v13 = vld [vmem:[%s3893_s9 + $0x54] sm:$0xf]  ;;  %v4634_v5 = vld [vmem:[%s3893_s9 + $0x60] sm:$0xf] }
 0x245   : > { %v1318_v41 = vor.u32 %v1317_v24, %v1313_v55  ;;  %v4597_v21 = vpack.c.b16 %v1543_v62, %v1542_v49  ;;  %v2201_v25 = vrot.slane %v4547_v61, 9  ;;  %v1416_v26 = vrot.slane %v1141_v60, 5 }
 0x246   : > { %v1415_v23 = vrot.slane %v1413_v30, 4  ;;  %v1309_v47 = vrot.slane %v1308_v45, 4  ;;  %v1323_v15 = vrot.slane %v1321_v33, 5  ;;  %v1326_v50 = vshrl.u32 %v4605_v13, 16 }
 0x247   : > { %v1319_v59 = vrot.slane %v1318_v41, 4  ;;  %v1414_v61 = vsel %vm4153_vm7, %v2201_v25, %v1413_v30  ;;  %v1329_v54 = vshll.u32 %v4605_v13, 16  ;;  %v1335_v44 = vshll.u32 %v4608_v16, 16 }
 0x248   : > { %v1417_v37 = vsel %vm4153_vm7, %v1415_v23, %v1416_v26  ;;  %v1314_v10 = vsel %vm4173_vm8, %v1309_v47, %v1313_v55  ;;  %v1339_v9 = vshrl.u32 %v4608_v16, 16  ;;  %v1574_v63 = vunpack.c.l.b16 %v1414_v61 }
 0x249   : > { %1692 = vmatmul.bf16.gmra.mxu1 %v4538_v1  ;;  %v1324_v36 = vsel %vm4173_vm8, %v1319_v59, %v1323_v15  ;;  %v1575_v51 = vunpack.c.l.b16 %v1417_v37  ;;  %v1544_v60 = vunpack.c.l.b16 %v1314_v10  ;;  %v1328_v29 = vrot.slane %v1326_v50, 4  ;;  %v4654_v15 = vld [vmem:[%s3893_s9 + $0x68] sm:$0x1] }
 0x24a   : > { %v1545_v18 = vunpack.c.l.b16 %v1324_v36  ;;  %v1331_v4 = vrot.slane %v1329_v54, 5  ;;  %v1337_v19 = vrot.slane %v1335_v44, 5  ;;  %v1341_v40 = vrot.slane %v1339_v9, 4  ;;  %v5315_v9 = vld [vmem:[#allocation20_spill] sm:$0xff] }
 0x24b   : > { %v1420_v7 = vrot.slane %v4579_v57, 5  ;;  %v1345_v20 = vshll.u32 %v1147_v11, 16  ;;  %v2202_v38 = vrot.slane %v4576_v53, 9  ;;  %v1423_v28 = vrot.slane %v1144_v27, 5  ;;  %v4637_v57 = vld [vmem:[%s3893_s9 + $0x64] sm:$0xf] }
 0x24c   : > { %v4625_v31 = vpack.c.b16 %v1545_v18, %v1544_v60  ;;  %v1332_v39 = vor.u32 %v1331_v4, %v1328_v29  ;;  %v1342_v48 = vor.u32 %v1341_v40, %v1337_v19  ;;  %v1433_v24 = vshrl.u32 %v4634_v5, 16 }
 0x24d   : > { %1741 = vmatmul.bf16.gmra.mxu2 %v4566_v43  ;;  %1790 = vmatmul.bf16.gmra.mxu3 %v5313_v42  ;;  %v4623_v42 = vpack.c.b16 %v1575_v51, %v1574_v63  ;;  %v1422_v56 = vrot.slane %v1420_v7, 4  ;;  %v1347_v8 = vrot.slane %v1345_v20, 5  ;;  %v1421_v32 = vsel %vm4153_vm7, %v2202_v38, %v1420_v7 }
 0x24e   : > { %1839 = vmatmul.bf16.gmra.mxu0 %v4568_v52  ;;  %v1333_v46 = vrot.slane %v1332_v39, 4  ;;  %v1343_v17 = vrot.slane %v1342_v48, 4  ;;  %v1436_v49 = vshll.u32 %v4634_v5, 16  ;;  %v1442_v62 = vshll.u32 %v4637_v57, 16 }
 0x24f   : > { %v1424_v22 = vsel %vm4153_vm7, %v1422_v56, %v1423_v28  ;;  %v1446_v27 = vshrl.u32 %v4637_v57, 16  ;;  %v1576_v30 = vunpack.c.l.b16 %v1421_v32  ;;  %v1435_v25 = vrot.slane %v1433_v24, 4 }
 0x250   : > { %v1338_v53 = vsel %vm4173_vm8, %v1333_v46, %v1337_v19  ;;  %v1348_v55 = vsel %vm4173_vm8, %v1343_v17, %v1347_v8  ;;  %v1577_v45 = vunpack.c.l.b16 %v1424_v22  ;;  %v1438_v26 = vrot.slane %v1436_v49, 5  ;;  %v4690_v22 = vld [vmem:[%s3893_s9 + $0x60] sm:$0xff] }
 0x251   : > { %v1546_v41 = vunpack.c.l.b16 %v1338_v53  ;;  %v1547_v33 = vunpack.c.l.b16 %v1348_v55  ;;  %v1444_v23 = vrot.slane %v1442_v62, 5  ;;  %v1448_v47 = vrot.slane %v1446_v27, 4 }
 0x252   : > { %v4656_v37 = vpack.c.b16 %v1577_v45, %v1576_v30  ;;  %v1427_v36 = vrot.slane %v4608_v16, 5  ;;  %v1439_v50 = vor.u32 %v1438_v26, %v1435_v25  ;;  %v1452_v44 = vshll.u32 %v4654_v15, 16  ;;  %v2331_v25 = vld [vmem:[%s3893_s9 + $0x18] sm:$0xff] }
 0x253   : > { %v4658_v10 = vpack.c.b16 %v1547_v33, %v1546_v41  ;;  %v1449_v54 = vor.u32 %v1448_v47, %v1444_v23  ;;  %v2203_v51 = vrot.slane %v4605_v13, 9  ;;  %v1430_v18 = vrot.slane %v1147_v11, 5 }
 0x254   : > { %v1429_v60 = vrot.slane %v1427_v36, 4  ;;  %v1440_v16 = vrot.slane %v1439_v50, 4  ;;  %v1454_v19 = vrot.slane %v1452_v44, 5 }
 0x255   : > { %v1450_v4 = vrot.slane %v1449_v54, 4  ;;  %v1428_v39 = vsel %vm4153_vm7, %v2203_v51, %v1427_v36 }
 0x256   : > { %v1431_v48 = vsel %vm4153_vm7, %v1429_v60, %v1430_v18  ;;  %v1445_v13 = vsel %vm4173_vm8, %v1440_v16, %v1444_v23  ;;  %v1578_v20 = vunpack.c.l.b16 %v1428_v39 }
 0x257   : > { %v1455_v11 = vsel %vm4173_vm8, %v1450_v4, %v1454_v19  ;;  %v1579_v38 = vunpack.c.l.b16 %v1431_v48 }
 0x258   : > { %v1601_v56 = vunpack.c.l.b16 %v1455_v11 }
 0x259   : > { %1697 = vmatmul.bf16.gmra.mxu1 %v4568_v52  ;;  %v4687_v32 = vpack.c.b16 %v1579_v38, %v1578_v20 }
 0x25d   : > { %1746 = vmatmul.bf16.gmra.mxu2 %v4594_v35  ;;  %1795 = vmatmul.bf16.gmra.mxu3 %v4137_v0 }
 0x25e   : > { %1844 = vmatmul.bf16.gmra.mxu0 %v4597_v21 }
 0x269   : > { %1702 = vmatmul.bf16.gmra.mxu1 %v4597_v21 }
 0x26d   : > { %1751 = vmatmul.bf16.gmra.mxu2 %v4623_v42  ;;  %1800 = vmatmul.bf16.gmra.mxu3 %v5314_v58  ;;  %v1600_v58 = vunpack.c.l.b16 %v1445_v13 }
 0x26e   : > { %1849 = vmatmul.bf16.gmra.mxu0 %v4625_v31 }
 0x26f   : > { %v4692_v53 = vpack.c.b16 %v1601_v56, %v1600_v58 }
 0x276   : > { %v4651_v59 = vpop.f32.mrf.mxu1  ;;  %v1629_v61 = vpop.f32.mrf.mxu0 }
 0x279   : > { %1707 = vmatmul.bf16.gmra.mxu1 %v4625_v31 }
 0x27d   : > { %1756 = vmatmul.bf16.gmra.mxu2 %v4656_v37  ;;  %1805 = vmatmul.bf16.gmra.mxu3 %v5315_v9 }
 0x27e   : > { %1854 = vmatmul.bf16.gmra.mxu0 %v4658_v10  ;;  %v4671_v40 = vpop.f32.mrf.mxu1  ;;  %v1631_v7 = vpop.f32.mrf.mxu0 }
 0x27f   : > { %v4666_v63 = vpop.f32.mrf.mxu2  ;;  %v4669_v29 = vpop.f32.mrf.mxu3 }
 0x286   : > { %v4685_v17 = vpop.f32.mrf.mxu1  ;;  %v1634_v8 = vpop.f32.mrf.mxu0 }
 0x287   : > { %v4681_v28 = vpop.f32.mrf.mxu2  ;;  %v4683_v46 = vpop.f32.mrf.mxu3 }
 0x289   : > { %1712 = vmatmul.bf16.gmra.mxu1 %v4658_v10 }
 0x28d   : > { %1761 = vmatmul.bf16.gmra.mxu2 %v4687_v32  ;;  %1810 = vmatmul.bf16.gmra.mxu3 %v4690_v22 }
 0x28e   : > { %1859 = vmatmul.bf16.gmra.mxu0 %v4692_v53  ;;  %v4702_v49 = vpop.f32.mrf.mxu1  ;;  %v1636_v62 = vpop.f32.mrf.mxu0 }
 0x28f   : > { %v4698_v55 = vpop.f32.mrf.mxu2  ;;  %v4700_v24 = vpop.f32.mrf.mxu3 }
 0x296   : > { %v1678_v45 = vpop.f32.mrf.mxu1 }
 0x297   : > { %v4704_v27 = vpop.f32.mrf.mxu2  ;;  %v4706_v30 = vpop.f32.mrf.mxu3  ;;  %v1679_v41 = vadd.f32 %v1678_v45, %v1629_v61 }
 0x299   : > { %1873 = vmatmul.bf16.vlgmr.msra.gmra.mxu1 %v4476_v12 }
 0x29b   : > { %v4708_v33 = vpop.f32.mrf.mxu0 }
 0x29d   : > { %1922 = vmatmul.bf16.vlgmr.msra.gmra.mxu2 %v2331_v25  ;;  %1971 = vmatmul.bf16.vlgmr.msra.gmra.mxu3 %v4492_v14 }
 0x29e   : > { %2020 = vmatmul.bf16.vlgmr.msra.gmra.mxu0 %v4535_v3  ;;  %v1680_v36 = vpop.f32.mrf.mxu1 }
 0x29f   : > { %v1681_v54 = vadd.f32 %v1680_v36, %v1631_v7 }
 0x2a0   : > { %v1727_v26 = vpop.f32.mrf.mxu2  ;;  %v1776_v47 = vpop.f32.mrf.mxu3 }
 0x2a1   : > { %v1728_v23 = vadd.f32 %v1727_v26, %v1679_v41 }
 0x2a3   : > { %v1777_v50 = vadd.f32 %v1776_v47, %v1728_v23  ;;  %v1827_v44 = vpop.f32.mrf.mxu0 }
 0x2a6   : > { %v1683_v60 = vpop.f32.mrf.mxu1 }
 0x2a7   : > { %v1684_v16 = vadd.f32 %v1683_v60, %v1634_v8  ;;  %v4744_v60 = vadd.f32 %v4708_v33, %v1777_v50  ;;  %v2333_v33 = vld [vmem:[%s3893_s9 + $0x48] sm:$0xff] }
 0x2a8   : > { %v1729_v9 = vpop.f32.mrf.mxu2  ;;  %v1778_v61 = vpop.f32.mrf.mxu3 }
 0x2a9   : > { %v1730_v51 = vadd.f32 %v1729_v9, %v1681_v54  ;;  %1878 = vmatmul.bf16.gmra.mxu1 %v4535_v3 }
 0x2ab   : > { %v1779_v18 = vadd.f32 %v1778_v61, %v1730_v51  ;;  %v4714_v12 = vpop.f32.mrf.mxu0 }
 0x2ad   : > { %1927 = vmatmul.bf16.gmra.mxu2 %v4134_v2  ;;  %1976 = vmatmul.bf16.gmra.mxu3 %v4538_v1  ;;  %v2332_v1 = vld [vmem:[%s3893_s9 + $0x30] sm:$0xff] }
 0x2ae   : > { %2025 = vmatmul.bf16.gmra.mxu0 %v4566_v43  ;;  %v1685_v7 = vpop.f32.mrf.mxu1 }
 0x2af   : > { %v1686_v48 = vadd.f32 %v1685_v7, %v1636_v62 }
 0x2b0   : > { %v1732_v14 = vpop.f32.mrf.mxu2  ;;  %v1781_v19 = vpop.f32.mrf.mxu3 }
 0x2b1   : > { %v1733_v4 = vadd.f32 %v1732_v14, %v1684_v16 }
 0x2b3   : > { %v1782_v39 = vadd.f32 %v1781_v19, %v1733_v4  ;;  %v4720_v13 = vpop.f32.mrf.mxu0 }
 0x2b6   : > { %v1688_v58 = vpop.f32.mrf.mxu1 }
 0x2b7   : > { %v1689_v2 = vadd.f32 %v1688_v58, %v4651_v59 }
 0x2b8   : > { %v1734_v11 = vpop.f32.mrf.mxu2  ;;  %v1783_v38 = vpop.f32.mrf.mxu3 }
 0x2b9   : > { %v1735_v20 = vadd.f32 %v1734_v11, %v1686_v48  ;;  %1883 = vmatmul.bf16.gmra.mxu1 %v4566_v43 }
 0x2bb   : > { %v1784_v3 = vadd.f32 %v1783_v38, %v1735_v20  ;;  %v4723_v56 = vpop.f32.mrf.mxu0 }
 0x2bd   : > { %1932 = vmatmul.bf16.gmra.mxu2 %v2332_v1  ;;  %1981 = vmatmul.bf16.gmra.mxu3 %v4568_v52 }
 0x2be   : > { %2030 = vmatmul.bf16.gmra.mxu0 %v4594_v35  ;;  %v1690_v41 = vpop.f32.mrf.mxu1 }
 0x2bf   : > { %v1691_v26 = vadd.f32 %v1690_v41, %v4671_v40  ;;  %v2334_v41 = vld [vmem:[%s3893_s9 + $0x54] sm:$0xff] }
 0x2c0   : > { %v1737_v8 = vpop.f32.mrf.mxu2  ;;  %v1786_v45 = vpop.f32.mrf.mxu3 }
 0x2c1   : > { %v1738_v62 = vadd.f32 %v1737_v8, %v1689_v2 }
 0x2c3   : > { %v4729_v25 = vadd.f32 %v1786_v45, %v1738_v62  ;;  %v4732_v23 = vpop.f32.mrf.mxu0  ;;  %v1461_v45 = vrot.slane %v4637_v57, 5  ;;  %v1151_v57 = vld [vmem:[%s3893_s9 + $0x6c] sm:$0xf] }
 0x2c6   : > { %v1693_v43 = vpop.f32.mrf.mxu1 }
 0x2c7   : > { %v1694_v52 = vadd.f32 %v1693_v43, %v4685_v17 }
 0x2c8   : > { %v1739_v59 = vpop.f32.mrf.mxu2  ;;  %v1788_v36 = vpop.f32.mrf.mxu3 }
 0x2c9   : > { %v1740_v47 = vadd.f32 %v1739_v59, %v1691_v26  ;;  %1888 = vmatmul.bf16.gmra.mxu1 %v4594_v35 }
 0x2cb   : > { %v4734_v54 = vadd.f32 %v1788_v36, %v1740_v47  ;;  %v4737_v9 = vpop.f32.mrf.mxu0  ;;  %v1152_v47 = vld [vmem:[%s3893_s9 + $0x70] sm:$0xf] }
 0x2cd   : > { %1937 = vmatmul.bf16.gmra.mxu2 %v4137_v0  ;;  %1986 = vmatmul.bf16.gmra.mxu3 %v4597_v21  ;;  %v4751_v21 = vadd.f32 %v1827_v44, %v1779_v18  ;;  %v4763_v18 = vadd.f32 %v4714_v12, %v1782_v39 }
 0x2ce   : > { %2035 = vmatmul.bf16.gmra.mxu0 %v4623_v42  ;;  %v1695_v16 = vpop.f32.mrf.mxu1 }
 0x2cf   : > { %v1696_v17 = vadd.f32 %v1695_v16, %v4702_v49  ;;  %v1480_v16 = vshrl.u32 %v1152_v47, 16 }
 0x2d0   : > { %v1742_v40 = vpop.f32.mrf.mxu2  ;;  %v1791_v61 = vpop.f32.mrf.mxu3 }
 0x2d1   : > { %v1743_v51 = vadd.f32 %v1742_v40, %v1694_v52  ;;  %v1467_v40 = vshrl.u32 %v1151_v57, 16 }
 0x2d3   : > { %v4746_v14 = vadd.f32 %v1791_v61, %v1743_v51  ;;  %v4749_v4 = vpop.f32.mrf.mxu0  ;;  %v1470_v51 = vshll.u32 %v1151_v57, 16  ;;  %v1476_v61 = vshll.u32 %v1152_v47, 16 }
 0x2d6   : > { %v1698_v7 = vpop.f32.mrf.mxu1 }
 0x2d7   : > { %v1699_v49 = vadd.f32 %v1698_v7, %v4666_v63  ;;  %v4771_v63 = vadd.f32 %v4720_v13, %v1784_v3  ;;  %v1463_v13 = vrot.slane %v1461_v45, 4  ;;  %v1464_v3 = vrot.slane %v4654_v15, 5  ;;  %v1153_v7 = vld [vmem:[%s3893_s9 + $0x74] sm:$0x1] }
 0x2d8   : > { %v1744_v35 = vpop.f32.mrf.mxu2  ;;  %v1793_v19 = vpop.f32.mrf.mxu3 }
 0x2d9   : > { %v1745_v0 = vadd.f32 %v1744_v35, %v1696_v17  ;;  %1893 = vmatmul.bf16.gmra.mxu1 %v4623_v42 }
 0x2db   : > { %v4753_v48 = vadd.f32 %v1793_v19, %v1745_v0  ;;  %v4755_v11 = vpop.f32.mrf.mxu0  ;;  %v1469_v0 = vrot.slane %v1467_v40, 4 }
 0x2dd   : > { %1942 = vmatmul.bf16.gmra.mxu2 %v2333_v33  ;;  %1991 = vmatmul.bf16.gmra.mxu3 %v4625_v31  ;;  %v1472_v33 = vrot.slane %v1470_v51, 5 }
 0x2de   : > { %2040 = vmatmul.bf16.gmra.mxu0 %v4656_v37  ;;  %v1700_v38 = vpop.f32.mrf.mxu1 }
 0x2df   : > { %v1701_v42 = vadd.f32 %v1700_v38, %v4681_v28  ;;  %v2204_v28 = vrot.slane %v4634_v5, 9  ;;  %v4793_v5 = vadd.f32 %v4723_v56, %v4729_v25  ;;  %v4803_v25 = vadd.f32 %v4732_v23, %v4734_v54 }
 0x2e0   : > { %v1747_v50 = vpop.f32.mrf.mxu2  ;;  %v1796_v44 = vpop.f32.mrf.mxu3  ;;  %v2205_v23 = vrot.slane %v1151_v57, 9  ;;  %v1498_v54 = vrot.slane %v1153_v7, 5 }
 0x2e1   : > { %v1748_v20 = vadd.f32 %v1747_v50, %v1699_v49  ;;  %v1462_v52 = vsel %vm4153_vm7, %v2204_v28, %v1461_v45  ;;  %v1478_v49 = vrot.slane %v1476_v61, 5  ;;  %v1482_v50 = vrot.slane %v1480_v16, 4 }
 0x2e2   : > { %v1604_v17 = vunpack.c.l.b16 %v1462_v52  ;;  %v1495_v45 = vrot.slane %v1152_v47, 5  ;;  %v4815_v47 = vadd.f32 %v4737_v9, %v4746_v14 }
 0x2e3   : > { %v4765_v58 = vadd.f32 %v1796_v44, %v1748_v20  ;;  %v4767_v2 = vpop.f32.mrf.mxu0 }
 0x2e6   : > { %v1703_v62 = vpop.f32.mrf.mxu1 }
 0x2e7   : > { %v1704_v26 = vadd.f32 %v1703_v62, %v4698_v55  ;;  %v1473_v62 = vor.u32 %v1472_v33, %v1469_v0  ;;  %v4833_v0 = vadd.f32 %v4749_v4, %v4753_v48  ;;  %v4843_v4 = vadd.f32 %v4755_v11, %v4765_v58 }
 0x2e8   : > { %v1749_v1 = vpop.f32.mrf.mxu2  ;;  %v1798_v8 = vpop.f32.mrf.mxu3 }
 0x2e9   : > { %v1750_v31 = vadd.f32 %v1749_v1, %v1701_v42  ;;  %1898 = vmatmul.bf16.gmra.mxu1 %v4656_v37  ;;  %v1486_v1 = vshll.u32 %v1153_v7, 16 }
 0x2eb   : > { %v4774_v12 = vadd.f32 %v1798_v8, %v1750_v31  ;;  %v4776_v39 = vpop.f32.mrf.mxu0 }
 0x2ed   : > { %1947 = vmatmul.bf16.gmra.mxu2 %v2334_v41  ;;  %1996 = vmatmul.bf16.gmra.mxu3 %v4658_v10  ;;  %v1465_v10 = vsel %vm4153_vm7, %v1463_v13, %v1464_v3  ;;  %v1488_v41 = vrot.slane %v1486_v1, 5  ;;  %v1474_v13 = vrot.slane %v1473_v62, 4  ;;  %v4850_v62 = vadd.f32 %v4767_v2, %v4774_v12 }
 0x2ee   : > { %2045 = vmatmul.bf16.gmra.mxu0 %v4687_v32  ;;  %v1705_v37 = vpop.f32.mrf.mxu1  ;;  %v1605_v35 = vunpack.c.l.b16 %v1465_v10 }
 0x2ef   : > { %v1706_v19 = vadd.f32 %v1705_v37, %v4704_v27  ;;  %v1483_v27 = vor.u32 %v1482_v50, %v1478_v49 }
 0x2f0   : > { %v1752_v59 = vpop.f32.mrf.mxu2  ;;  %v1801_v43 = vpop.f32.mrf.mxu3  ;;  %v1606_v42 = vpack.c.b16 %v1605_v35, %v1604_v17  ;;  %v2259_v35 = vld [vmem:[%s3893_s9 + $0x6c] sm:$0xff] }
 0x2f1   : > { %v1753_v36 = vadd.f32 %v1752_v59, %v1704_v26  ;;  %v1484_v3 = vrot.slane %v1483_v27, 4  ;;  %v1497_v26 = vrot.slane %v1495_v45, 4 }
 0x2f3   : > { %v4795_v15 = vadd.f32 %v1801_v43, %v1753_v36  ;;  %v4797_v55 = vpop.f32.mrf.mxu0  ;;  %v1489_v37 = vsel %vm4173_vm8, %v1484_v3, %v1488_v41  ;;  %v1499_v52 = vsel %vm4153_vm7, %v1497_v26, %v1498_v54 }
 0x2f4   : > { %v1613_v14 = vunpack.c.l.b16 %v1489_v37  ;;  %v1617_v40 = vunpack.c.l.b16 %v1499_v52 }
 0x2f5   : > { %v4856_v54 = vadd.f32 %v4776_v39, %v4795_v15 }
 0x2f6   : > { %v1708_v38 = vpop.f32.mrf.mxu1 }
 0x2f7   : > { %v1709_v28 = vadd.f32 %v1708_v38, %v4669_v29  ;;  %v1479_v29 = vsel %vm4173_vm8, %v1474_v13, %v1478_v49 }
 0x2f8   : > { %v1754_v20 = vpop.f32.mrf.mxu2  ;;  %v1803_v56 = vpop.f32.mrf.mxu3  ;;  %v1612_v9 = vunpack.c.l.b16 %v1479_v29 }
 0x2f9   : > { %v1755_v44 = vadd.f32 %v1754_v20, %v1706_v19  ;;  %1903 = vmatmul.bf16.gmra.mxu1 %v4687_v32 }
 0x2fa   : > { %v1614_v19 = vpack.c.b16 %v1613_v14, %v1612_v9 }
 0x2fb   : > { %v4805_v31 = vadd.f32 %v1803_v56, %v1755_v44  ;;  %v4807_v8 = vpop.f32.mrf.mxu0 }
 0x2fd   : > { %1952 = vmatmul.bf16.gmra.mxu2 %v4690_v22  ;;  %2001 = vmatmul.bf16.gmra.mxu3 %v4692_v53  ;;  %v1496_v22 = vsel %vm4153_vm7, %v2205_v23, %v1495_v45  ;;  %v4867_v39 = vadd.f32 %v4797_v55, %v4805_v31 }
 0x2fe   : > { %2050 = vmatmul.bf16.gmra.mxu0 %v1606_v42  ;;  %v1710_v32 = vpop.f32.mrf.mxu1  ;;  %v1616_v10 = vunpack.c.l.b16 %v1496_v22 }
 0x2ff   : > { %v1711_v51 = vadd.f32 %v1710_v32, %v4683_v46 }
 0x300   : > { %v1757_v59 = vpop.f32.mrf.mxu2  ;;  %v1806_v43 = vpop.f32.mrf.mxu3  ;;  %v1618_v7 = vpack.c.b16 %v1617_v40, %v1616_v10 }
 0x301   : > { %v1758_v36 = vadd.f32 %v1757_v59, %v1709_v28 }
 0x303   : > { %v4819_v53 = vadd.f32 %v1806_v43, %v1758_v36  ;;  %v4821_v57 = vpop.f32.mrf.mxu0 }
 0x306   : > { %v1713_v6 = vpop.f32.mrf.mxu1 }
 0x307   : > { %v1714_v46 = vadd.f32 %v1713_v6, %v4700_v24 }
 0x308   : > { %v1759_v61 = vpop.f32.mrf.mxu2  ;;  %v1808_v17 = vpop.f32.mrf.mxu3 }
 0x309   : > { %v1760_v16 = vadd.f32 %v1759_v61, %v1711_v51  ;;  %1908 = vmatmul.bf16.gmra.mxu1 %v1606_v42 }
 0x30b   : > { %v4835_v34 = vadd.f32 %v1808_v17, %v1760_v16  ;;  %v4837_v33 = vpop.f32.mrf.mxu0 }
 0x30d   : > { %1957 = vmatmul.bf16.gmra.mxu2 %v2259_v35  ;;  %2006 = vmatmul.bf16.gmra.mxu3 %v1614_v19 }
 0x30e   : > { %2055 = vmatmul.bf16.gmra.mxu0 %v1618_v7  ;;  %v1715_v48 = vpop.f32.mrf.mxu1 }
 0x30f   : > { %v1716_v38 = vadd.f32 %v1715_v48, %v4706_v30 }
 0x310   : > { %v1762_v49 = vpop.f32.mrf.mxu2  ;;  %v1811_v20 = vpop.f32.mrf.mxu3 }
 0x311   : > { %v1763_v50 = vadd.f32 %v1762_v49, %v1714_v46 }
 0x313   : > { %v1812_v44 = vadd.f32 %v1811_v20, %v1763_v50  ;;  %v4845_v56 = vpop.f32.mrf.mxu0 }
 0x316   : > { %v1874_v27 = vpop.f32.mrf.mxu1 }
 0x317   : > { %v1875_v11 = vadd.f32 %v1874_v27, %v4744_v60 }
 0x318   : > { %v1764_v42 = vpop.f32.mrf.mxu2  ;;  %v1813_v24 = vpop.f32.mrf.mxu3 }
 0x319   : > { %v1765_v1 = vadd.f32 %v1764_v42, %v1716_v38 }
 0x31b   : > { %v1814_v45 = vadd.f32 %v1813_v24, %v1765_v1  ;;  %v2021_v41 = vpop.f32.mrf.mxu0 }
 0x31e   : > { %v1876_v28 = vpop.f32.mrf.mxu1 }
 0x31f   : > { %v1877_v60 = vadd.f32 %v1876_v28, %v4751_v21  ;;  %v4873_v21 = vadd.f32 %v4807_v8, %v4819_v53 }
 0x320   : > { %v1923_v58 = vpop.f32.mrf.mxu2  ;;  %v1972_v30 = vpop.f32.mrf.mxu3 }
 0x321   : > { %v1924_v23 = vadd.f32 %v1923_v58, %v1875_v11 }
 0x323   : > { %v1973_v13 = vadd.f32 %v1972_v30, %v1924_v23  ;;  %v2023_v2 = vpop.f32.mrf.mxu0 }
 0x325   : > { %v2022_v12 = vadd.f32 %v2021_v41, %v1973_v13 }
 0x326   : > { %v1879_v15 = vpop.f32.mrf.mxu1 }
 0x327   : > { %2061 = vst [vmem:[%s4861_s23] sm:$0xff] %v2022_v12  ;;  %v1880_v22 = vadd.f32 %v1879_v15, %v4763_v18  ;;  %v4879_v18 = vadd.f32 %v4821_v57, %v4835_v34 }
 0x328   : > { %v1925_v3 = vpop.f32.mrf.mxu2  ;;  %v1974_v59 = vpop.f32.mrf.mxu3 }
 0x329   : > { %v1926_v26 = vadd.f32 %v1925_v3, %v1877_v60 }
 0x32b   : > { %v1975_v36 = vadd.f32 %v1974_v59, %v1926_v26  ;;  %v2026_v43 = vpop.f32.mrf.mxu0 }
 0x32d   : > { %v2024_v32 = vadd.f32 %v2023_v2, %v1975_v36 }
 0x32e   : > { %v1881_v9 = vpop.f32.mrf.mxu1 }
 0x32f   : > { %2062 = vst [vmem:[%s4861_s23 + $0x8] sm:$0xff] %v2024_v32  ;;  %v1882_v31 = vadd.f32 %v1881_v9, %v4771_v63  ;;  %v4884_v63 = vadd.f32 %v4837_v33, %v1812_v44 }
 0x330   : > { %v1928_v29 = vpop.f32.mrf.mxu2  ;;  %v1977_v52 = vpop.f32.mrf.mxu3 }
 0x331   : > { %v1929_v37 = vadd.f32 %v1928_v29, %v1880_v22 }
 0x333   : > { %v1978_v14 = vadd.f32 %v1977_v52, %v1929_v37  ;;  %v2028_v10 = vpop.f32.mrf.mxu0 }
 0x335   : > { %v2027_v55 = vadd.f32 %v2026_v43, %v1978_v14 }
 0x336   : > { %v1884_v16 = vpop.f32.mrf.mxu1 }
 0x337   : > { %2063 = vst [vmem:[%s4861_s23 + $0x10] sm:$0xff] %v2027_v55  ;;  %v1885_v53 = vadd.f32 %v1884_v16, %v4793_v5  ;;  %v4889_v5 = vadd.f32 %v4845_v56, %v1814_v45 }
 0x338   : > { %v1930_v40 = vpop.f32.mrf.mxu2  ;;  %v1979_v61 = vpop.f32.mrf.mxu3 }
 0x339   : > { %v1931_v51 = vadd.f32 %v1930_v40, %v1882_v31 }
 0x33b   : > { %v1980_v17 = vadd.f32 %v1979_v61, %v1931_v51  ;;  %v2031_v35 = vpop.f32.mrf.mxu0 }
 0x33d   : > { %v2029_v8 = vadd.f32 %v2028_v10, %v1980_v17 }
 0x33e   : > { %v1886_v46 = vpop.f32.mrf.mxu1 }
 0x33f   : > { %2064 = vst [vmem:[%s4861_s23 + $0x18] sm:$0xff] %v2029_v8  ;;  %v1887_v57 = vadd.f32 %v1886_v46, %v4803_v25 }
 0x340   : > { %v1933_v6 = vpop.f32.mrf.mxu2  ;;  %v1982_v7 = vpop.f32.mrf.mxu3 }
 0x341   : > { %v1934_v19 = vadd.f32 %v1933_v6, %v1885_v53 }
 0x343   : > { %v1983_v49 = vadd.f32 %v1982_v7, %v1934_v19  ;;  %v2033_v50 = vpop.f32.mrf.mxu0 }
 0x345   : > { %v2032_v20 = vadd.f32 %v2031_v35, %v1983_v49 }
 0x346   : > { %v1889_v42 = vpop.f32.mrf.mxu1 }
 0x347   : > { %2065 = vst [vmem:[%s4861_s23 + $0x20] sm:$0xff] %v2032_v20  ;;  %v1890_v33 = vadd.f32 %v1889_v42, %v4815_v47 }
 0x348   : > { %v1935_v34 = vpop.f32.mrf.mxu2  ;;  %v1984_v38 = vpop.f32.mrf.mxu3 }
 0x349   : > { %v1936_v48 = vadd.f32 %v1935_v34, %v1887_v57 }
 0x34b   : > { %v1985_v1 = vadd.f32 %v1984_v38, %v1936_v48  ;;  %v2036_v24 = vpop.f32.mrf.mxu0 }
 0x34d   : > { %v2034_v27 = vadd.f32 %v2033_v50, %v1985_v1 }
 0x34e   : > { %v1891_v58 = vpop.f32.mrf.mxu1 }
 0x34f   : > { %2066 = vst [vmem:[%s4861_s23 + $0x28] sm:$0xff] %v2034_v27  ;;  %v1892_v28 = vadd.f32 %v1891_v58, %v4833_v0 }
 0x350   : > { %v1938_v44 = vpop.f32.mrf.mxu2  ;;  %v1987_v11 = vpop.f32.mrf.mxu3 }
 0x351   : > { %v1939_v41 = vadd.f32 %v1938_v44, %v1890_v33 }
 0x353   : > { %v1988_v25 = vadd.f32 %v1987_v11, %v1939_v41  ;;  %v2038_v23 = vpop.f32.mrf.mxu0 }
 0x355   : > { %v2037_v30 = vadd.f32 %v2036_v24, %v1988_v25 }
 0x356   : > { %v1894_v2 = vpop.f32.mrf.mxu1 }
 0x357   : > { %2067 = vst [vmem:[%s4861_s23 + $0x30] sm:$0xff] %v2037_v30  ;;  %v1895_v47 = vadd.f32 %v1894_v2, %v4843_v4 }
 0x358   : > { %v1940_v56 = vpop.f32.mrf.mxu2  ;;  %v1989_v13 = vpop.f32.mrf.mxu3 }
 0x359   : > { %v1941_v45 = vadd.f32 %v1940_v56, %v1892_v28 }
 0x35b   : > { %v1990_v12 = vadd.f32 %v1989_v13, %v1941_v45  ;;  %v2041_v60 = vpop.f32.mrf.mxu0 }
 0x35d   : > { %v2039_v3 = vadd.f32 %v2038_v23, %v1990_v12 }
 0x35e   : > { %v1896_v36 = vpop.f32.mrf.mxu1 }
 0x35f   : > { %2068 = vst [vmem:[%s4861_s23 + $0x38] sm:$0xff] %v2039_v3  ;;  %v1897_v0 = vadd.f32 %v1896_v36, %v4850_v62 }
 0x360   : > { %v1943_v26 = vpop.f32.mrf.mxu2  ;;  %v1992_v15 = vpop.f32.mrf.mxu3 }
 0x361   : > { %v1944_v59 = vadd.f32 %v1943_v26, %v1895_v47 }
 0x363   : > { %v1993_v43 = vadd.f32 %v1992_v15, %v1944_v59  ;;  %v2043_v32 = vpop.f32.mrf.mxu0 }
 0x365   : > { %v2042_v22 = vadd.f32 %v2041_v60, %v1993_v43 }
 0x366   : > { %v1899_v9 = vpop.f32.mrf.mxu1 }
 0x367   : > { %2069 = vst [vmem:[%s4861_s23 + $0x40] sm:$0xff] %v2042_v22  ;;  %v1900_v4 = vadd.f32 %v1899_v9, %v4856_v54 }
 0x368   : > { %v1945_v29 = vpop.f32.mrf.mxu2  ;;  %v1994_v52 = vpop.f32.mrf.mxu3 }
 0x369   : > { %v1946_v37 = vadd.f32 %v1945_v29, %v1897_v0 }
 0x36b   : > { %v1995_v14 = vadd.f32 %v1994_v52, %v1946_v37  ;;  %v2046_v10 = vpop.f32.mrf.mxu0 }
 0x36d   : > { %v2044_v55 = vadd.f32 %v2043_v32, %v1995_v14 }
 0x36e   : > { %v1901_v61 = vpop.f32.mrf.mxu1 }
 0x36f   : > { %2070 = vst [vmem:[%s4861_s23 + $0x48] sm:$0xff] %v2044_v55  ;;  %v1902_v62 = vadd.f32 %v1901_v61, %v4867_v39 }
 0x370   : > { %v1948_v31 = vpop.f32.mrf.mxu2  ;;  %v1997_v51 = vpop.f32.mrf.mxu3 }
 0x371   : > { %v1949_v40 = vadd.f32 %v1948_v31, %v1900_v4 }
 0x373   : > { %v1998_v16 = vadd.f32 %v1997_v51, %v1949_v40  ;;  %v2048_v17 = vpop.f32.mrf.mxu0 }
 0x375   : > { %v2047_v35 = vadd.f32 %v2046_v10, %v1998_v16 }
 0x376   : > { %v1904_v19 = vpop.f32.mrf.mxu1 }
 0x377   : > { %2071 = vst [vmem:[%s4861_s23 + $0x50] sm:$0xff] %v2047_v35  ;;  %v1905_v54 = vadd.f32 %v1904_v19, %v4873_v21 }
 0x378   : > { %v1950_v8 = vpop.f32.mrf.mxu2  ;;  %v1999_v6 = vpop.f32.mrf.mxu3 }
 0x379   : > { %v1951_v53 = vadd.f32 %v1950_v8, %v1902_v62 }
 0x37b   : > { %v2000_v7 = vadd.f32 %v1999_v6, %v1951_v53  ;;  %v2051_v49 = vpop.f32.mrf.mxu0 }
 0x37d   : > { %v2049_v46 = vadd.f32 %v2048_v17, %v2000_v7 }
 0x37e   : > { %v1906_v34 = vpop.f32.mrf.mxu1 }
 0x37f   : > { %2072 = vst [vmem:[%s4861_s23 + $0x58] sm:$0xff] %v2049_v46  ;;  %v1907_v39 = vadd.f32 %v1906_v34, %v4879_v18 }
 0x380   : > { %v1953_v50 = vpop.f32.mrf.mxu2  ;;  %v2002_v57 = vpop.f32.mrf.mxu3 }
 0x381   : > { %v1954_v20 = vadd.f32 %v1953_v50, %v1905_v54 }
 0x383   : > { %v2003_v48 = vadd.f32 %v2002_v57, %v1954_v20  ;;  %v2053_v42 = vpop.f32.mrf.mxu0 }
 0x385   : > { %v2052_v38 = vadd.f32 %v2051_v49, %v2003_v48 }
 0x386   : > { %v1909_v33 = vpop.f32.mrf.mxu1 }
 0x387   : > { %2073 = vst [vmem:[%s4861_s23 + $0x60] sm:$0xff] %v2052_v38  ;;  %v1910_v21 = vadd.f32 %v1909_v33, %v4884_v63 }
 0x388   : > { %v1955_v1 = vpop.f32.mrf.mxu2  ;;  %v2004_v27 = vpop.f32.mrf.mxu3 }
 0x389   : > { %v1956_v24 = vadd.f32 %v1955_v1, %v1907_v39 }
 0x38b   : > { %v2005_v44 = vadd.f32 %v2004_v27, %v1956_v24  ;;  %v2056_v23 = vpop.f32.mrf.mxu0 }
 0x38d   : > { %v2054_v41 = vadd.f32 %v2053_v42, %v2005_v44 }
 0x38e   : > { %v1911_v28 = vpop.f32.mrf.mxu1 }
 0x38f   : > { %2074 = vst [vmem:[%s4861_s23 + $0x68] sm:$0xff] %v2054_v41  ;;  %v1912_v18 = vadd.f32 %v1911_v28, %v4889_v5 }
 0x390   : > { %v1958_v11 = vpop.f32.mrf.mxu2  ;;  %v2007_v25 = vpop.f32.mrf.mxu3 }
 0x391   : > { %v1959_v58 = vadd.f32 %v1958_v11, %v1910_v21 }
 0x393   : > { %v2008_v30 = vadd.f32 %v2007_v25, %v1959_v58  ;;  %v2058_v60 = vpop.f32.mrf.mxu0 }
 0x395   : > { %v2057_v56 = vadd.f32 %v2056_v23, %v2008_v30 }
 0x397   : > { %2075 = vst [vmem:[%s4861_s23 + $0x70] sm:$0xff] %v2057_v56 }
 0x398   : > { %v1960_v45 = vpop.f32.mrf.mxu2  ;;  %v2009_v2 = vpop.f32.mrf.mxu3 }
 0x399   : > { %v1961_v13 = vadd.f32 %v1960_v45, %v1912_v18 }
 0x39b   : > { %v2010_v12 = vadd.f32 %v2009_v2, %v1961_v13 }
 0x39d   : > { %v2059_v3 = vadd.f32 %v2058_v60, %v2010_v12 }
 0x39f   : > { %2076 = vst [vmem:[%s4861_s23 + $0x78] sm:$0xff] %v2059_v3 }
 0x3a0 PF: > { %s13_s16 = sadd.s32 1, %s2373_s16   ;;  %s5316_s12 = smov %s2365_s14 }
 0x3a1   : > { %p10_p7 = scmp.ge.s32.totalorder %s13_s16, 6   ;;  %s5317_s13 = smov %s2369_s15 }
 0x3a2   : > { %s5318_s14 = smov %s5321_s17  ;;  %s5319_s15 = smov %s5325_s18 }
 0x3a3   :  { %12 = sbr.rel (!%p10_p7) target bundleno = 3 (0x3), region = 66 }

</bundles_post_ra>
